<compile_context>
chip_gen: v6e
topology: v6e:2x2x1
jax: 0.10.0
libtpu: 0.0.40
codegen_flags: <defaults>
</compile_context>

<pallas_src>
import functools

import jax
import jax.numpy as jnp
import numpy as np
from jax import lax
from jax.experimental import pallas as pl
from jax.experimental.pallas import tpu as pltpu


# --------------------------------------------------------------------------
# Hardware queries (best effort; safe fallbacks).
# --------------------------------------------------------------------------
def _vmem_capacity_bytes():
    try:
        return int(pltpu.get_tpu_info().vmem_capacity_bytes)
    except Exception:
        return 64 * 1024 * 1024          # conservative (v7x per-TC VMEM)


def _num_tensorcores():
    """Chips that expose 2 TensorCores to a single Pallas grid (megacore)."""
    try:
        kind = jax.devices()[0].device_kind.lower()
    except Exception:
        return 1
    return 2 if any(tag in kind for tag in ("v4", "v5p", "7")) else 1


# --------------------------------------------------------------------------
# Kernel
# --------------------------------------------------------------------------
def _bilstm_max_kernel(T_pad, len_ref, gf_ref, gb_ref, whh_ref, out_ref,
                       hf_s, hb_s, cf_s, cb_s, mxf_s, mxb_s):
    """Grid = (batch_blocks, time_chunks); time axis is 'arbitrary' (state
    carried in VMEM scratch across chunks).

    len_ref: [bb, 1]  int32   valid sequence lengths
    gf_ref:  [TC, bb, 4H] bf16 forward input gates (bias folded, i/f/o scaled)
    gb_ref:  [TC, bb, 4H] bf16 backward input gates, chunk streamed in reverse
                               time order via its BlockSpec index_map
    whh_ref: [2H, 8H] bf16    block-diagonal recurrent weight (pre-scaled)
    out_ref: [bb, 2H] f32     [max_fwd | max_bwd]
    *_s:     [bb, H]  f32     persistent per-direction state across chunks
    """
    TC, bb, H4 = gf_ref.shape
    H = H4 // 4
    tc_idx = pl.program_id(1)
    nt = pl.num_programs(1)

    @pl.when(tc_idx == 0)
    def _():
        hf_s[...] = jnp.zeros_like(hf_s)
        hb_s[...] = jnp.zeros_like(hb_s)
        cf_s[...] = jnp.zeros_like(cf_s)
        cb_s[...] = jnp.zeros_like(cb_s)
        mxf_s[...] = jnp.full_like(mxf_s, -jnp.inf)
        mxb_s[...] = jnp.full_like(mxb_s, -jnp.inf)

    lengths = len_ref[...]                                  # [bb, 1] int32
    bwd_start = T_pad - lengths                             # [bb, 1] int32
    whh = whh_ref[...]                                      # [2H, 8H] bf16

    # tanh -> sigmoid fixup masks (hoisted out of the recurrence).
    lane4 = lax.broadcasted_iota(jnp.int32, (1, H4), 1)
    is_g = jnp.logical_and(lane4 >= 2 * H, lane4 < 3 * H)   # g-gate lanes
    m1 = jnp.where(is_g, 1.0, 0.5).astype(jnp.float32)
    m2 = jnp.where(is_g, 0.0, 0.5).astype(jnp.float32)

    t0 = tc_idx * TC

    def step(j, carry):
        h_f, h_b, c_f, c_b, mx_f, mx_b = carry              # [bb, H] f32 each
        s = t0 + j                       # fwd real time; bwd real time = T_pad-1-s
        # One recurrent matmul per step covers both directions.
        # TODO(synk): keep whh resident in the MXU across the loop via
        # pltpu.matmul_push_rhs/acc_lhs/pop to avoid re-pushing the RHS.
        h2 = jnp.concatenate([h_f, h_b], axis=-1).astype(jnp.bfloat16)
        hh = jnp.dot(h2, whh, preferred_element_type=jnp.float32)   # [bb, 8H]
        gf = gf_ref[j] + hh[:, :H4]
        gb = gb_ref[TC - 1 - j] + hh[:, H4:]
        # sigmoid(a) == 0.5*(tanh(a/2)+1); the 0.5 is folded into the weights,
        # so one tanh + cheap VPU fixup yields all four gates per direction.
        af = jnp.tanh(gf) * m1 + m2
        ab = jnp.tanh(gb) * m1 + m2
        cf_n = af[:, H:2 * H] * c_f + af[:, 0:H] * af[:, 2 * H:3 * H]
        cb_n = ab[:, H:2 * H] * c_b + ab[:, 0:H] * ab[:, 2 * H:3 * H]
        hf_n = af[:, 3 * H:] * jnp.tanh(cf_n)
        hb_n = ab[:, 3 * H:] * jnp.tanh(cb_n)
        vf = s < lengths                                    # [bb, 1] bool
        vb = s >= bwd_start                                 # [bb, 1] bool
        h_f = jnp.where(vf, hf_n, h_f)
        c_f = jnp.where(vf, cf_n, c_f)
        mx_f = jnp.where(vf, jnp.maximum(mx_f, hf_n), mx_f)
        h_b = jnp.where(vb, hb_n, h_b)
        c_b = jnp.where(vb, cb_n, c_b)
        mx_b = jnp.where(vb, jnp.maximum(mx_b, hb_n), mx_b)
        return h_f, h_b, c_f, c_b, mx_f, mx_b

    carry0 = (hf_s[...], hb_s[...], cf_s[...], cb_s[...], mxf_s[...], mxb_s[...])
    h_f, h_b, c_f, c_b, mx_f, mx_b = lax.fori_loop(
        0, TC, step, carry0, unroll=min(TC, 16))
    hf_s[...] = h_f
    hb_s[...] = h_b
    cf_s[...] = c_f
    cb_s[...] = c_b
    mxf_s[...] = mx_f
    mxb_s[...] = mx_b

    @pl.when(tc_idx == nt - 1)
    def _():
        out_ref[...] = jnp.concatenate([mx_f, mx_b], axis=-1)   # [bb, 2H]


# --------------------------------------------------------------------------
# One-time weight preprocessing (PyTorch layout -> fused kernel layout).
# --------------------------------------------------------------------------
def _prep_params(params):
    H = params["whh_f"].shape[1]
    # 0.5 scale on i/f/o gate columns folds the sigmoid into a single tanh.
    s4 = jnp.concatenate([jnp.full((2 * H,), 0.5, jnp.float32),
                          jnp.ones((H,), jnp.float32),
                          jnp.full((H,), 0.5, jnp.float32)])

    def prep_dir(wih, whh, b):
        wih_s = wih.T.astype(jnp.float32) * s4[None, :]     # [E, 4H]
        whh_s = whh.T.astype(jnp.float32) * s4[None, :]     # [H, 4H]
        b_s = b.astype(jnp.float32) * s4                    # [4H]
        return wih_s, whh_s, b_s

    wih_f, whh_f, b_f = prep_dir(params["wih_f"], params["whh_f"], params["b_f"])
    wih_b, whh_b, b_b = prep_dir(params["wih_b"], params["whh_b"], params["b_b"])

    # Input projection [E+1, 8H]: columns = [fwd 4H | bwd 4H] (torch i,f,g,o
    # order per direction); the last row is the (scaled) bias, applied via a
    # constant 1.0 column appended to the embedding table.
    wih_comb = jnp.concatenate(
        [jnp.concatenate([wih_f, wih_b], axis=1),
         jnp.concatenate([b_f, b_b])[None, :]], axis=0).astype(jnp.bfloat16)

    # Block-diagonal recurrent weight [2H, 8H]: rows 0:H (h_fwd) feed the fwd
    # gate columns, rows H:2H (h_bwd) feed the bwd gate columns.
    zero = jnp.zeros((H, 4 * H), jnp.float32)
    whh_comb = jnp.concatenate(
        [jnp.concatenate([whh_f, zero], axis=1),
         jnp.concatenate([zero, whh_b], axis=1)], axis=0).astype(jnp.bfloat16)

    emb = params["embeddings"].astype(jnp.float32)
    emb_aug = jnp.concatenate(
        [emb, jnp.ones((emb.shape[0], 1), jnp.float32)], axis=1
    ).astype(jnp.bfloat16)

    return dict(emb_aug=emb_aug, wih_comb=wih_comb, whh_comb=whh_comb, H=H)


# --------------------------------------------------------------------------
# Forward wrapper
# --------------------------------------------------------------------------
def lstm_module_forward(token_ids, prep):
    """token_ids: [B, T] int32 (0 = padding). Returns [B, 2H] float32."""
    H = prep["H"]
    assert H % 32 == 0, "hidden_size must be a multiple of 32 (4H % 128 == 0)"
    H2, H4, H8 = 2 * H, 4 * H, 8 * H
    B, T = token_ids.shape

    # --- batch padding and per-TensorCore batch block ----------------------
    num_tc = _num_tensorcores()
    B_pad = -(-B // 8) * 8
    if num_tc > 1:
        B_pad = -(-B_pad // (8 * num_tc)) * (8 * num_tc)
    bb = B_pad // num_tc if num_tc > 1 else B_pad
    # vreg-pressure cap: keep the per-step f32 gate block (bb x 8H x 4B)
    # roughly within the 64 x 4 KiB register file.
    bb_cap = max(8, (4096 // H) // 8 * 8)
    while bb > bb_cap and bb % 16 == 0:
        bb //= 2
    nb = B_pad // bb

    # --- time chunk and VMEM budget (per chip generation) ------------------
    vmem_cap = _vmem_capacity_bytes()
    budget = vmem_cap // 2
    fixed = (2 * (H2 * H8 * 2)            # whh double-buffer (bf16)
             + 2 * (bb * H2 * 4)          # output block
             + 6 * bb * H * 4             # state scratch
             + bb * 4 * 2                 # lengths
             + (1 << 20))                 # slack
    per_step = 2 * 2 * bb * H4 * 2        # 2 gate streams x dbl-buffer x bf16
    TC = int(max(8, min(128, (budget - fixed) // per_step)))
    if T <= TC:
        TC = T
    T_pad = -(-T // TC) * TC
    nt = T_pad // TC
    vmem_limit = int(min(vmem_cap - (vmem_cap >> 3),
                         max(32 << 20, fixed + per_step * TC + (8 << 20))))

    # --- glue: lengths, time-major embedding gather, fused input projection -
    tok = token_ids.astype(jnp.int32)
    if B_pad != B or T_pad != T:
        tok = jnp.pad(tok, ((0, B_pad - B), (0, T_pad - T)))
    pos = jnp.arange(1, T_pad + 1, dtype=jnp.int32)
    lengths = jnp.max(jnp.where(tok != 0, pos, 0), axis=1).astype(jnp.int32)

    # Time-major gather of (embedding | 1.0) rows; the trailing 1.0 applies the
    # bias row folded into wih_comb.  Single big matmul, bf16 streamed gates.
    x = jnp.take(prep["emb_aug"], tok.T, axis=0)            # [T_pad, B_pad, E+1]
    gates = jnp.dot(x.reshape(T_pad * B_pad, -1), prep["wih_comb"],
                    preferred_element_type=jnp.float32)
    gates = gates.astype(jnp.bfloat16).reshape(T_pad, B_pad, H8)

    kernel = functools.partial(_bilstm_max_kernel, T_pad)
    out = pl.pallas_call(
        kernel,
        out_shape=jax.ShapeDtypeStruct((B_pad, H2), jnp.float32),
        grid_spec=pltpu.PrefetchScalarGridSpec(
            num_scalar_prefetch=0,
            grid=(nb, nt),
            in_specs=[
                pl.BlockSpec((bb, 1), lambda b, t: (b, 0)),            # lengths
                # forward gate stream: columns 0:4H, chunks in time order
                pl.BlockSpec((TC, bb, H4), lambda b, t: (t, b, 0)),
                # backward gate stream: columns 4H:8H, chunks in REVERSE time
                # order (free BlockSpec indexing instead of an HBM reversal)
                pl.BlockSpec((TC, bb, H4), lambda b, t: (nt - 1 - t, b, 1)),
                pl.BlockSpec((H2, H8), lambda b, t: (0, 0)),           # whh
            ],
            out_specs=pl.BlockSpec((bb, H2), lambda b, t: (b, 0)),
            scratch_shapes=[pltpu.VMEM((bb, H), jnp.float32)] * 6,
        ),
        compiler_params=pltpu.CompilerParams(
            dimension_semantics=("parallel", "arbitrary"),
            vmem_limit_bytes=vmem_limit),
    )(lengths[:, None], gates, gates, prep["whh_comb"])
    return out[:B]                      # [B, 2H] = [max_fwd | max_bwd]


# --------------------------------------------------------------------------
# Pure-JAX reference (original module structure: independent per-direction
# loops, sigmoid/tanh gates, per-step masking).  It rounds the input-gate
# pre-activations (and bias) to bf16 to match the kernel's bf16 MXU operands
# and bf16 gate streaming; the fused structure itself is validated because the
# reference computes each direction separately with plain gate math.
# --------------------------------------------------------------------------
def lstm_module_ref(token_ids, params):
    emb = params["embeddings"].astype(jnp.float32)
    H = params["whh_f"].shape[1]
    B, T = token_ids.shape
    pos = jnp.arange(1, T + 1, dtype=jnp.int32)
    lengths = jnp.max(jnp.where(token_ids != 0, pos, 0), axis=1).astype(jnp.int32)
    x_emb = jnp.take(emb, token_ids, axis=0)                  # [B, T, E]

    def run_dir(wih, whh, b, reverse):
        wih_t = wih.T.astype(jnp.bfloat16)
        whh_t = whh.T.astype(jnp.bfloat16)
        b32 = b.astype(jnp.bfloat16).astype(jnp.float32)
        h = jnp.zeros((B, H), jnp.float32)
        c = jnp.zeros((B, H), jnp.float32)
        mx = jnp.full((B, H), -jnp.inf, jnp.float32)
        ts = range(T - 1, -1, -1) if reverse else range(T)
        for t in ts:
            x_t = x_emb[:, t, :].astype(jnp.bfloat16)
            gi = jnp.dot(x_t, wih_t, preferred_element_type=jnp.float32) + b32
            gi = gi.astype(jnp.bfloat16).astype(jnp.float32)  # bf16 gate stream
            gates = gi + jnp.dot(h.astype(jnp.bfloat16), whh_t,
                                 preferred_element_type=jnp.float32)
            i = jax.nn.sigmoid(gates[:, :H])
            f = jax.nn.sigmoid(gates[:, H:2 * H])
            g = jnp.tanh(gates[:, 2 * H:3 * H])
            o = jax.nn.sigmoid(gates[:, 3 * H:])
            c_new = f * c + i * g
            h_new = o * jnp.tanh(c_new)
            valid = (t < lengths)[:, None]
            h = jnp.where(valid, h_new, h)
            c = jnp.where(valid, c_new, c)
            mx = jnp.where(valid, jnp.maximum(mx, h_new), mx)
        return mx

    max_f = run_dir(params["wih_f"], params["whh_f"], params["b_f"], False)
    max_b = run_dir(params["wih_b"], params["whh_b"], params["b_b"], True)
    return jnp.concatenate([max_f, max_b], axis=-1)


if __name__ == "__main__":
    # Small shapes implied by the module: tokens [B, T], embed E, hidden H.
    B, T, E, H, V = 4, 8, 32, 32, 50

    key = jax.random.PRNGKey(0)
    k = jax.random.split(key, 12)
    bound = 1.0 / np.sqrt(H)
    params = dict(
        embeddings=jax.random.normal(k[0], (V, E), jnp.float32),
        # torch nn.LSTM parameter layout: weight_ih [4H, E], weight_hh [4H, H]
        wih_f=jax.random.uniform(k[1], (4 * H, E), jnp.float32, -bound, bound),
        whh_f=jax.random.uniform(k[2], (4 * H, H), jnp.float32, -bound, bound),
        b_f=(jax.random.uniform(k[3], (4 * H,), jnp.float32, -bound, bound)
             + jax.random.uniform(k[4], (4 * H,), jnp.float32, -bound, bound)),
        wih_b=jax.random.uniform(k[5], (4 * H, E), jnp.float32, -bound, bound),
        whh_b=jax.random.uniform(k[6], (4 * H, H), jnp.float32, -bound, bound),
        b_b=(jax.random.uniform(k[7], (4 * H,), jnp.float32, -bound, bound)
             + jax.random.uniform(k[8], (4 * H,), jnp.float32, -bound, bound)),
    )

    # Token ids in [1, V); zero-pad suffixes to create variable-length rows.
    token_ids = jax.random.randint(k[9], (B, T), 1, V, dtype=jnp.int32)
    true_lengths = jnp.array([T, 5, 3, 7], dtype=jnp.int32)
    mask = jnp.arange(T)[None, :] < true_lengths[:, None]
    token_ids = jnp.where(mask, token_ids, 0)

    prep = _prep_params(params)          # one-time weight preprocessing
    out = lstm_module_forward(token_ids, prep)
    out = jax.block_until_ready(out)
    assert out.shape == (B, 2 * H)

    ref = lstm_module_ref(token_ids, params)
    # Kernel and reference share bf16 matmul operands / bf16 gate streaming
    # (f32 accumulation); 2e-3 leaves margin for the sigmoid-vs-tanh-identity
    # implementation difference and rare bf16 rounding-boundary flips.
    np.testing.assert_allclose(np.asarray(out), np.asarray(ref),
                               rtol=2e-3, atol=2e-3)
    print("KERNEL_OK")
</pallas_src>

<mosaic_0001>
module attributes {stable_mosaic.version = 11 : i64} {
  func.func @_bilstm_max_kernel(%arg0: i32, %arg1: i32, %arg2: memref<8x1xi32, #tpu.memory_space<vmem>>, %arg3: memref<8x8x128xbf16, #tpu.memory_space<vmem>>, %arg4: memref<8x8x128xbf16, #tpu.memory_space<vmem>>, %arg5: memref<64x256xbf16, #tpu.memory_space<vmem>>, %arg6: memref<8x64xf32, #tpu.memory_space<vmem>>, %arg7: memref<8x32xf32, #tpu.memory_space<vmem>>, %arg8: memref<8x32xf32, #tpu.memory_space<vmem>>, %arg9: memref<8x32xf32, #tpu.memory_space<vmem>>, %arg10: memref<8x32xf32, #tpu.memory_space<vmem>>, %arg11: memref<8x32xf32, #tpu.memory_space<vmem>>, %arg12: memref<8x32xf32, #tpu.memory_space<vmem>>) attributes {dimension_semantics = [#tpu.dimension_semantics<parallel>, #tpu.dimension_semantics<arbitrary>], iteration_bounds = array<i64: 1, 1>, scalar_prefetch = 0 : i64, scratch_operands = 6 : i64, tpu.core_type = #tpu.core_type<tc>, window_params = [{transform_indices = @transform_0, window_bounds = array<i64: 8, 1>}, {transform_indices = @transform_1, window_bounds = array<i64: 8, 8, 128>}, {transform_indices = @transform_2, window_bounds = array<i64: 8, 8, 128>}, {pipeline_mode = #tpu.pipeline_mode<synchronous>, transform_indices = @transform_3, window_bounds = array<i64: 64, 256>}, {transform_indices = @transform_4, window_bounds = array<i64: 8, 64>}]} {
    %c0_i32 = arith.constant 0 : i32
    %0 = arith.cmpi eq, %arg1, %c0_i32 : i32
    %1 = arith.extui %0 : i1 to i32
    %c0_i32_0 = arith.constant 0 : i32
    %2 = arith.cmpi ne, %1, %c0_i32_0 : i32
    scf.if %2 {
      %cst_84 = arith.constant 0.000000e+00 : f32
      %587 = vector.broadcast %cst_84 : f32 to vector<8x32xf32>
      %c0_85 = arith.constant 0 : index
      %c0_86 = arith.constant 0 : index
      %588 = vector.load %arg7[%c0_85, %c0_86] : memref<8x32xf32, #tpu.memory_space<vmem>>, vector<8x32xf32>
      tpu.vector_store %arg7[%c0_85, %c0_86], %587 {strides = array<i32>} : memref<8x32xf32, #tpu.memory_space<vmem>>, vector<8x32xf32>,
      %cst_87 = arith.constant 0.000000e+00 : f32
      %589 = vector.broadcast %cst_87 : f32 to vector<8x32xf32>
      %c0_88 = arith.constant 0 : index
      %c0_89 = arith.constant 0 : index
      %590 = vector.load %arg8[%c0_88, %c0_89] : memref<8x32xf32, #tpu.memory_space<vmem>>, vector<8x32xf32>
      tpu.vector_store %arg8[%c0_88, %c0_89], %589 {strides = array<i32>} : memref<8x32xf32, #tpu.memory_space<vmem>>, vector<8x32xf32>,
      %cst_90 = arith.constant 0.000000e+00 : f32
      %591 = vector.broadcast %cst_90 : f32 to vector<8x32xf32>
      %c0_91 = arith.constant 0 : index
      %c0_92 = arith.constant 0 : index
      %592 = vector.load %arg9[%c0_91, %c0_92] : memref<8x32xf32, #tpu.memory_space<vmem>>, vector<8x32xf32>
      tpu.vector_store %arg9[%c0_91, %c0_92], %591 {strides = array<i32>} : memref<8x32xf32, #tpu.memory_space<vmem>>, vector<8x32xf32>,
      %cst_93 = arith.constant 0.000000e+00 : f32
      %593 = vector.broadcast %cst_93 : f32 to vector<8x32xf32>
      %c0_94 = arith.constant 0 : index
      %c0_95 = arith.constant 0 : index
      %594 = vector.load %arg10[%c0_94, %c0_95] : memref<8x32xf32, #tpu.memory_space<vmem>>, vector<8x32xf32>
      tpu.vector_store %arg10[%c0_94, %c0_95], %593 {strides = array<i32>} : memref<8x32xf32, #tpu.memory_space<vmem>>, vector<8x32xf32>,
      %cst_96 = arith.constant 0xFF800000 : f32
      %595 = vector.broadcast %cst_96 : f32 to vector<8x32xf32>
      %c0_97 = arith.constant 0 : index
      %c0_98 = arith.constant 0 : index
      %596 = vector.load %arg11[%c0_97, %c0_98] : memref<8x32xf32, #tpu.memory_space<vmem>>, vector<8x32xf32>
      tpu.vector_store %arg11[%c0_97, %c0_98], %595 {strides = array<i32>} : memref<8x32xf32, #tpu.memory_space<vmem>>, vector<8x32xf32>,
      %cst_99 = arith.constant 0xFF800000 : f32
      %597 = vector.broadcast %cst_99 : f32 to vector<8x32xf32>
      %c0_100 = arith.constant 0 : index
      %c0_101 = arith.constant 0 : index
      %598 = vector.load %arg12[%c0_100, %c0_101] : memref<8x32xf32, #tpu.memory_space<vmem>>, vector<8x32xf32>
      tpu.vector_store %arg12[%c0_100, %c0_101], %597 {strides = array<i32>} : memref<8x32xf32, #tpu.memory_space<vmem>>, vector<8x32xf32>,
    } else {
    }
    %c0 = arith.constant 0 : index
    %c0_1 = arith.constant 0 : index
    %3 = vector.load %arg2[%c0, %c0_1] : memref<8x1xi32, #tpu.memory_space<vmem>>, vector<8x1xi32>
    %c8_i32 = arith.constant 8 : i32
    %4 = vector.broadcast %c8_i32 : i32 to vector<8x1xi32>
    %5 = arith.subi %4, %3 : vector<8x1xi32>
    %c0_2 = arith.constant 0 : index
    %c0_3 = arith.constant 0 : index
    %6 = vector.load %arg5[%c0_2, %c0_3] : memref<64x256xbf16, #tpu.memory_space<vmem>>, vector<64x256xbf16>
    %7 = tpu.iota {dimensions = array<i32: 1>} : vector<1x128xi32>
    %c64_i32 = arith.constant 64 : i32
    %8 = vector.broadcast %c64_i32 : i32 to vector<1x128xi32>
    %9 = arith.cmpi sge, %7, %8 : vector<1x128xi32>
    %c96_i32 = arith.constant 96 : i32
    %10 = vector.broadcast %c96_i32 : i32 to vector<1x128xi32>
    %11 = arith.cmpi slt, %7, %10 : vector<1x128xi32>
    %12 = arith.andi %9, %11 : vector<1x128xi1>
    %cst = arith.constant 1.000000e+00 : f32
    %cst_4 = arith.constant 5.000000e-01 : f32
    %13 = vector.broadcast %cst : f32 to vector<1x128xf32>
    %14 = vector.broadcast %cst_4 : f32 to vector<1x128xf32>
    %15 = arith.select %12, %13, %14 : vector<1x128xi1>, vector<1x128xf32>
    %cst_5 = arith.constant 0.000000e+00 : f32
    %cst_6 = arith.constant 5.000000e-01 : f32
    %16 = vector.broadcast %cst_5 : f32 to vector<1x128xf32>
    %17 = vector.broadcast %cst_6 : f32 to vector<1x128xf32>
    %18 = arith.select %12, %16, %17 : vector<1x128xi1>, vector<1x128xf32>
    %c8_i32_7 = arith.constant 8 : i32
    %19 = arith.muli %arg1, %c8_i32_7 : i32
    %c0_8 = arith.constant 0 : index
    %c0_9 = arith.constant 0 : index
    %20 = vector.load %arg7[%c0_8, %c0_9] : memref<8x32xf32, #tpu.memory_space<vmem>>, vector<8x32xf32>
    %c0_10 = arith.constant 0 : index
    %c0_11 = arith.constant 0 : index
    %21 = vector.load %arg8[%c0_10, %c0_11] : memref<8x32xf32, #tpu.memory_space<vmem>>, vector<8x32xf32>
    %c0_12 = arith.constant 0 : index
    %c0_13 = arith.constant 0 : index
    %22 = vector.load %arg9[%c0_12, %c0_13] : memref<8x32xf32, #tpu.memory_space<vmem>>, vector<8x32xf32>
    %c0_14 = arith.constant 0 : index
    %c0_15 = arith.constant 0 : index
    %23 = vector.load %arg10[%c0_14, %c0_15] : memref<8x32xf32, #tpu.memory_space<vmem>>, vector<8x32xf32>
    %c0_16 = arith.constant 0 : index
    %c0_17 = arith.constant 0 : index
    %24 = vector.load %arg11[%c0_16, %c0_17] : memref<8x32xf32, #tpu.memory_space<vmem>>, vector<8x32xf32>
    %c0_18 = arith.constant 0 : index
    %c0_19 = arith.constant 0 : index
    %25 = vector.load %arg12[%c0_18, %c0_19] : memref<8x32xf32, #tpu.memory_space<vmem>>, vector<8x32xf32>
    %c0_i32_20 = arith.constant 0 : i32
    %26 = arith.addi %19, %c0_i32_20 : i32
    %27 = tpu.concatenate %20, %21 in 1 : vector<8x32xf32>, vector<8x32xf32> -> vector<8x64xf32>
    %28 = arith.truncf %27 : vector<8x64xf32> to vector<8x64xbf16>
    %cst_21 = arith.constant dense<0.000000e+00> : vector<8x256xf32>
    %29 = tpu.matmul %28, %6, %cst_21 {dimension_numbers = #tpu.dot_dimension_numbers<[1], [0], [0], [1], [0, 0, 1, 1], [], []>} : vector<8x64xbf16>, vector<64x256xbf16>, vector<8x256xf32> -> vector<8x256xf32>
    %30 = arith.index_cast %c0_i32_20 : i32 to index
    %c0_22 = arith.constant 0 : index
    %c0_23 = arith.constant 0 : index
    %31 = vector.load %arg3[%30, %c0_22, %c0_23] : memref<8x8x128xbf16, #tpu.memory_space<vmem>>, vector<1x8x128xbf16>
    %32 = vector.shape_cast %31 : vector<1x8x128xbf16> to vector<8x128xbf16>
    %33 = vector.extract_strided_slice %29 {offsets = [0, 0], sizes = [8, 128], strides = [1, 1]} : vector<8x256xf32> to vector<8x128xf32>
    %34 = arith.extf %32 : vector<8x128xbf16> to vector<8x128xf32>
    %35 = arith.addf %34, %33 : vector<8x128xf32>
    %c7_i32 = arith.constant 7 : i32
    %36 = arith.subi %c7_i32, %c0_i32_20 : i32
    %37 = arith.index_cast %36 : i32 to index
    %c0_24 = arith.constant 0 : index
    %c0_25 = arith.constant 0 : index
    %38 = vector.load %arg4[%37, %c0_24, %c0_25] : memref<8x8x128xbf16, #tpu.memory_space<vmem>>, vector<1x8x128xbf16>
    %39 = vector.shape_cast %38 : vector<1x8x128xbf16> to vector<8x128xbf16>
    %40 = vector.extract_strided_slice %29 {offsets = [0, 128], sizes = [8, 128], strides = [1, 1]} : vector<8x256xf32> to vector<8x128xf32>
    %41 = arith.extf %39 : vector<8x128xbf16> to vector<8x128xf32>
    %42 = arith.addf %41, %40 : vector<8x128xf32>
    %43 = math.tanh %35 : vector<8x128xf32>
    %44 = vector.broadcast %15 : vector<1x128xf32> to vector<8x128xf32>
    %45 = arith.mulf %43, %44 : vector<8x128xf32>
    %46 = vector.broadcast %18 : vector<1x128xf32> to vector<8x128xf32>
    %47 = arith.addf %45, %46 : vector<8x128xf32>
    %48 = math.tanh %42 : vector<8x128xf32>
    %49 = vector.broadcast %15 : vector<1x128xf32> to vector<8x128xf32>
    %50 = arith.mulf %48, %49 : vector<8x128xf32>
    %51 = vector.broadcast %18 : vector<1x128xf32> to vector<8x128xf32>
    %52 = arith.addf %50, %51 : vector<8x128xf32>
    %53 = vector.extract_strided_slice %47 {offsets = [0, 32], sizes = [8, 32], strides = [1, 1]} : vector<8x128xf32> to vector<8x32xf32>
    %54 = arith.mulf %53, %22 : vector<8x32xf32>
    %55 = vector.extract_strided_slice %47 {offsets = [0, 0], sizes = [8, 32], strides = [1, 1]} : vector<8x128xf32> to vector<8x32xf32>
    %56 = vector.extract_strided_slice %47 {offsets = [0, 64], sizes = [8, 32], strides = [1, 1]} : vector<8x128xf32> to vector<8x32xf32>
    %57 = arith.mulf %55, %56 : vector<8x32xf32>
    %58 = arith.addf %54, %57 : vector<8x32xf32>
    %59 = vector.extract_strided_slice %52 {offsets = [0, 32], sizes = [8, 32], strides = [1, 1]} : vector<8x128xf32> to vector<8x32xf32>
    %60 = arith.mulf %59, %23 : vector<8x32xf32>
    %61 = vector.extract_strided_slice %52 {offsets = [0, 0], sizes = [8, 32], strides = [1, 1]} : vector<8x128xf32> to vector<8x32xf32>
    %62 = vector.extract_strided_slice %52 {offsets = [0, 64], sizes = [8, 32], strides = [1, 1]} : vector<8x128xf32> to vector<8x32xf32>
    %63 = arith.mulf %61, %62 : vector<8x32xf32>
    %64 = arith.addf %60, %63 : vector<8x32xf32>
    %65 = vector.extract_strided_slice %47 {offsets = [0, 96], sizes = [8, 32], strides = [1, 1]} : vector<8x128xf32> to vector<8x32xf32>
    %66 = math.tanh %58 : vector<8x32xf32>
    %67 = arith.mulf %65, %66 : vector<8x32xf32>
    %68 = vector.extract_strided_slice %52 {offsets = [0, 96], sizes = [8, 32], strides = [1, 1]} : vector<8x128xf32> to vector<8x32xf32>
    %69 = math.tanh %64 : vector<8x32xf32>
    %70 = arith.mulf %68, %69 : vector<8x32xf32>
    %71 = vector.broadcast %26 : i32 to vector<8x1xi32>
    %72 = arith.cmpi slt, %71, %3 : vector<8x1xi32>
    %73 = vector.broadcast %26 : i32 to vector<8x1xi32>
    %74 = arith.cmpi sge, %73, %5 : vector<8x1xi32>
    %75 = vector.shape_cast %72 : vector<8x1xi1> to vector<8x1xi1>
    %76 = vector.broadcast %75 : vector<8x1xi1> to vector<8x32xi1>
    %77 = arith.select %76, %67, %20 : vector<8x32xi1>, vector<8x32xf32>
    %78 = vector.shape_cast %72 : vector<8x1xi1> to vector<8x1xi1>
    %79 = vector.broadcast %78 : vector<8x1xi1> to vector<8x32xi1>
    %80 = arith.select %79, %58, %22 : vector<8x32xi1>, vector<8x32xf32>
    %81 = arith.maximumf %24, %67 : vector<8x32xf32>
    %82 = vector.shape_cast %72 : vector<8x1xi1> to vector<8x1xi1>
    %83 = vector.broadcast %82 : vector<8x1xi1> to vector<8x32xi1>
    %84 = arith.select %83, %81, %24 : vector<8x32xi1>, vector<8x32xf32>
    %85 = vector.shape_cast %74 : vector<8x1xi1> to vector<8x1xi1>
    %86 = vector.broadcast %85 : vector<8x1xi1> to vector<8x32xi1>
    %87 = arith.select %86, %70, %21 : vector<8x32xi1>, vector<8x32xf32>
    %88 = vector.shape_cast %74 : vector<8x1xi1> to vector<8x1xi1>
    %89 = vector.broadcast %88 : vector<8x1xi1> to vector<8x32xi1>
    %90 = arith.select %89, %64, %23 : vector<8x32xi1>, vector<8x32xf32>
    %91 = arith.maximumf %25, %70 : vector<8x32xf32>
    %92 = vector.shape_cast %74 : vector<8x1xi1> to vector<8x1xi1>
    %93 = vector.broadcast %92 : vector<8x1xi1> to vector<8x32xi1>
    %94 = arith.select %93, %91, %25 : vector<8x32xi1>, vector<8x32xf32>
    %c1_i32 = arith.constant 1 : i32
    %95 = arith.addi %19, %c1_i32 : i32
    %96 = tpu.concatenate %77, %87 in 1 : vector<8x32xf32>, vector<8x32xf32> -> vector<8x64xf32>
    %97 = arith.truncf %96 : vector<8x64xf32> to vector<8x64xbf16>
    %cst_26 = arith.constant dense<0.000000e+00> : vector<8x256xf32>
    %98 = tpu.matmul %97, %6, %cst_26 {dimension_numbers = #tpu.dot_dimension_numbers<[1], [0], [0], [1], [0, 0, 1, 1], [], []>} : vector<8x64xbf16>, vector<64x256xbf16>, vector<8x256xf32> -> vector<8x256xf32>
    %99 = arith.index_cast %c1_i32 : i32 to index
    %c0_27 = arith.constant 0 : index
    %c0_28 = arith.constant 0 : index
    %100 = vector.load %arg3[%99, %c0_27, %c0_28] : memref<8x8x128xbf16, #tpu.memory_space<vmem>>, vector<1x8x128xbf16>
    %101 = vector.shape_cast %100 : vector<1x8x128xbf16> to vector<8x128xbf16>
    %102 = vector.extract_strided_slice %98 {offsets = [0, 0], sizes = [8, 128], strides = [1, 1]} : vector<8x256xf32> to vector<8x128xf32>
    %103 = arith.extf %101 : vector<8x128xbf16> to vector<8x128xf32>
    %104 = arith.addf %103, %102 : vector<8x128xf32>
    %c7_i32_29 = arith.constant 7 : i32
    %105 = arith.subi %c7_i32_29, %c1_i32 : i32
    %106 = arith.index_cast %105 : i32 to index
    %c0_30 = arith.constant 0 : index
    %c0_31 = arith.constant 0 : index
    %107 = vector.load %arg4[%106, %c0_30, %c0_31] : memref<8x8x128xbf16, #tpu.memory_space<vmem>>, vector<1x8x128xbf16>
    %108 = vector.shape_cast %107 : vector<1x8x128xbf16> to vector<8x128xbf16>
    %109 = vector.extract_strided_slice %98 {offsets = [0, 128], sizes = [8, 128], strides = [1, 1]} : vector<8x256xf32> to vector<8x128xf32>
    %110 = arith.extf %108 : vector<8x128xbf16> to vector<8x128xf32>
    %111 = arith.addf %110, %109 : vector<8x128xf32>
    %112 = math.tanh %104 : vector<8x128xf32>
    %113 = vector.broadcast %15 : vector<1x128xf32> to vector<8x128xf32>
    %114 = arith.mulf %112, %113 : vector<8x128xf32>
    %115 = vector.broadcast %18 : vector<1x128xf32> to vector<8x128xf32>
    %116 = arith.addf %114, %115 : vector<8x128xf32>
    %117 = math.tanh %111 : vector<8x128xf32>
    %118 = vector.broadcast %15 : vector<1x128xf32> to vector<8x128xf32>
    %119 = arith.mulf %117, %118 : vector<8x128xf32>
    %120 = vector.broadcast %18 : vector<1x128xf32> to vector<8x128xf32>
    %121 = arith.addf %119, %120 : vector<8x128xf32>
    %122 = vector.extract_strided_slice %116 {offsets = [0, 32], sizes = [8, 32], strides = [1, 1]} : vector<8x128xf32> to vector<8x32xf32>
    %123 = arith.mulf %122, %80 : vector<8x32xf32>
    %124 = vector.extract_strided_slice %116 {offsets = [0, 0], sizes = [8, 32], strides = [1, 1]} : vector<8x128xf32> to vector<8x32xf32>
    %125 = vector.extract_strided_slice %116 {offsets = [0, 64], sizes = [8, 32], strides = [1, 1]} : vector<8x128xf32> to vector<8x32xf32>
    %126 = arith.mulf %124, %125 : vector<8x32xf32>
    %127 = arith.addf %123, %126 : vector<8x32xf32>
    %128 = vector.extract_strided_slice %121 {offsets = [0, 32], sizes = [8, 32], strides = [1, 1]} : vector<8x128xf32> to vector<8x32xf32>
    %129 = arith.mulf %128, %90 : vector<8x32xf32>
    %130 = vector.extract_strided_slice %121 {offsets = [0, 0], sizes = [8, 32], strides = [1, 1]} : vector<8x128xf32> to vector<8x32xf32>
    %131 = vector.extract_strided_slice %121 {offsets = [0, 64], sizes = [8, 32], strides = [1, 1]} : vector<8x128xf32> to vector<8x32xf32>
    %132 = arith.mulf %130, %131 : vector<8x32xf32>
    %133 = arith.addf %129, %132 : vector<8x32xf32>
    %134 = vector.extract_strided_slice %116 {offsets = [0, 96], sizes = [8, 32], strides = [1, 1]} : vector<8x128xf32> to vector<8x32xf32>
    %135 = math.tanh %127 : vector<8x32xf32>
    %136 = arith.mulf %134, %135 : vector<8x32xf32>
    %137 = vector.extract_strided_slice %121 {offsets = [0, 96], sizes = [8, 32], strides = [1, 1]} : vector<8x128xf32> to vector<8x32xf32>
    %138 = math.tanh %133 : vector<8x32xf32>
    %139 = arith.mulf %137, %138 : vector<8x32xf32>
    %140 = vector.broadcast %95 : i32 to vector<8x1xi32>
    %141 = arith.cmpi slt, %140, %3 : vector<8x1xi32>
    %142 = vector.broadcast %95 : i32 to vector<8x1xi32>
    %143 = arith.cmpi sge, %142, %5 : vector<8x1xi32>
    %144 = vector.shape_cast %141 : vector<8x1xi1> to vector<8x1xi1>
    %145 = vector.broadcast %144 : vector<8x1xi1> to vector<8x32xi1>
    %146 = arith.select %145, %136, %77 : vector<8x32xi1>, vector<8x32xf32>
    %147 = vector.shape_cast %141 : vector<8x1xi1> to vector<8x1xi1>
    %148 = vector.broadcast %147 : vector<8x1xi1> to vector<8x32xi1>
    %149 = arith.select %148, %127, %80 : vector<8x32xi1>, vector<8x32xf32>
    %150 = arith.maximumf %84, %136 : vector<8x32xf32>
    %151 = vector.shape_cast %141 : vector<8x1xi1> to vector<8x1xi1>
    %152 = vector.broadcast %151 : vector<8x1xi1> to vector<8x32xi1>
    %153 = arith.select %152, %150, %84 : vector<8x32xi1>, vector<8x32xf32>
    %154 = vector.shape_cast %143 : vector<8x1xi1> to vector<8x1xi1>
    %155 = vector.broadcast %154 : vector<8x1xi1> to vector<8x32xi1>
    %156 = arith.select %155, %139, %87 : vector<8x32xi1>, vector<8x32xf32>
    %157 = vector.shape_cast %143 : vector<8x1xi1> to vector<8x1xi1>
    %158 = vector.broadcast %157 : vector<8x1xi1> to vector<8x32xi1>
    %159 = arith.select %158, %133, %90 : vector<8x32xi1>, vector<8x32xf32>
    %160 = arith.maximumf %94, %139 : vector<8x32xf32>
    %161 = vector.shape_cast %143 : vector<8x1xi1> to vector<8x1xi1>
    %162 = vector.broadcast %161 : vector<8x1xi1> to vector<8x32xi1>
    %163 = arith.select %162, %160, %94 : vector<8x32xi1>, vector<8x32xf32>
    %c2_i32 = arith.constant 2 : i32
    %164 = arith.addi %19, %c2_i32 : i32
    %165 = tpu.concatenate %146, %156 in 1 : vector<8x32xf32>, vector<8x32xf32> -> vector<8x64xf32>
    %166 = arith.truncf %165 : vector<8x64xf32> to vector<8x64xbf16>
    %cst_32 = arith.constant dense<0.000000e+00> : vector<8x256xf32>
    %167 = tpu.matmul %166, %6, %cst_32 {dimension_numbers = #tpu.dot_dimension_numbers<[1], [0], [0], [1], [0, 0, 1, 1], [], []>} : vector<8x64xbf16>, vector<64x256xbf16>, vector<8x256xf32> -> vector<8x256xf32>
    %168 = arith.index_cast %c2_i32 : i32 to index
    %c0_33 = arith.constant 0 : index
    %c0_34 = arith.constant 0 : index
    %169 = vector.load %arg3[%168, %c0_33, %c0_34] : memref<8x8x128xbf16, #tpu.memory_space<vmem>>, vector<1x8x128xbf16>
    %170 = vector.shape_cast %169 : vector<1x8x128xbf16> to vector<8x128xbf16>
    %171 = vector.extract_strided_slice %167 {offsets = [0, 0], sizes = [8, 128], strides = [1, 1]} : vector<8x256xf32> to vector<8x128xf32>
    %172 = arith.extf %170 : vector<8x128xbf16> to vector<8x128xf32>
    %173 = arith.addf %172, %171 : vector<8x128xf32>
    %c7_i32_35 = arith.constant 7 : i32
    %174 = arith.subi %c7_i32_35, %c2_i32 : i32
    %175 = arith.index_cast %174 : i32 to index
    %c0_36 = arith.constant 0 : index
    %c0_37 = arith.constant 0 : index
    %176 = vector.load %arg4[%175, %c0_36, %c0_37] : memref<8x8x128xbf16, #tpu.memory_space<vmem>>, vector<1x8x128xbf16>
    %177 = vector.shape_cast %176 : vector<1x8x128xbf16> to vector<8x128xbf16>
    %178 = vector.extract_strided_slice %167 {offsets = [0, 128], sizes = [8, 128], strides = [1, 1]} : vector<8x256xf32> to vector<8x128xf32>
    %179 = arith.extf %177 : vector<8x128xbf16> to vector<8x128xf32>
    %180 = arith.addf %179, %178 : vector<8x128xf32>
    %181 = math.tanh %173 : vector<8x128xf32>
    %182 = vector.broadcast %15 : vector<1x128xf32> to vector<8x128xf32>
    %183 = arith.mulf %181, %182 : vector<8x128xf32>
    %184 = vector.broadcast %18 : vector<1x128xf32> to vector<8x128xf32>
    %185 = arith.addf %183, %184 : vector<8x128xf32>
    %186 = math.tanh %180 : vector<8x128xf32>
    %187 = vector.broadcast %15 : vector<1x128xf32> to vector<8x128xf32>
    %188 = arith.mulf %186, %187 : vector<8x128xf32>
    %189 = vector.broadcast %18 : vector<1x128xf32> to vector<8x128xf32>
    %190 = arith.addf %188, %189 : vector<8x128xf32>
    %191 = vector.extract_strided_slice %185 {offsets = [0, 32], sizes = [8, 32], strides = [1, 1]} : vector<8x128xf32> to vector<8x32xf32>
    %192 = arith.mulf %191, %149 : vector<8x32xf32>
    %193 = vector.extract_strided_slice %185 {offsets = [0, 0], sizes = [8, 32], strides = [1, 1]} : vector<8x128xf32> to vector<8x32xf32>
    %194 = vector.extract_strided_slice %185 {offsets = [0, 64], sizes = [8, 32], strides = [1, 1]} : vector<8x128xf32> to vector<8x32xf32>
    %195 = arith.mulf %193, %194 : vector<8x32xf32>
    %196 = arith.addf %192, %195 : vector<8x32xf32>
    %197 = vector.extract_strided_slice %190 {offsets = [0, 32], sizes = [8, 32], strides = [1, 1]} : vector<8x128xf32> to vector<8x32xf32>
    %198 = arith.mulf %197, %159 : vector<8x32xf32>
    %199 = vector.extract_strided_slice %190 {offsets = [0, 0], sizes = [8, 32], strides = [1, 1]} : vector<8x128xf32> to vector<8x32xf32>
    %200 = vector.extract_strided_slice %190 {offsets = [0, 64], sizes = [8, 32], strides = [1, 1]} : vector<8x128xf32> to vector<8x32xf32>
    %201 = arith.mulf %199, %200 : vector<8x32xf32>
    %202 = arith.addf %198, %201 : vector<8x32xf32>
    %203 = vector.extract_strided_slice %185 {offsets = [0, 96], sizes = [8, 32], strides = [1, 1]} : vector<8x128xf32> to vector<8x32xf32>
    %204 = math.tanh %196 : vector<8x32xf32>
    %205 = arith.mulf %203, %204 : vector<8x32xf32>
    %206 = vector.extract_strided_slice %190 {offsets = [0, 96], sizes = [8, 32], strides = [1, 1]} : vector<8x128xf32> to vector<8x32xf32>
    %207 = math.tanh %202 : vector<8x32xf32>
    %208 = arith.mulf %206, %207 : vector<8x32xf32>
    %209 = vector.broadcast %164 : i32 to vector<8x1xi32>
    %210 = arith.cmpi slt, %209, %3 : vector<8x1xi32>
    %211 = vector.broadcast %164 : i32 to vector<8x1xi32>
    %212 = arith.cmpi sge, %211, %5 : vector<8x1xi32>
    %213 = vector.shape_cast %210 : vector<8x1xi1> to vector<8x1xi1>
    %214 = vector.broadcast %213 : vector<8x1xi1> to vector<8x32xi1>
    %215 = arith.select %214, %205, %146 : vector<8x32xi1>, vector<8x32xf32>
    %216 = vector.shape_cast %210 : vector<8x1xi1> to vector<8x1xi1>
    %217 = vector.broadcast %216 : vector<8x1xi1> to vector<8x32xi1>
    %218 = arith.select %217, %196, %149 : vector<8x32xi1>, vector<8x32xf32>
    %219 = arith.maximumf %153, %205 : vector<8x32xf32>
    %220 = vector.shape_cast %210 : vector<8x1xi1> to vector<8x1xi1>
    %221 = vector.broadcast %220 : vector<8x1xi1> to vector<8x32xi1>
    %222 = arith.select %221, %219, %153 : vector<8x32xi1>, vector<8x32xf32>
    %223 = vector.shape_cast %212 : vector<8x1xi1> to vector<8x1xi1>
    %224 = vector.broadcast %223 : vector<8x1xi1> to vector<8x32xi1>
    %225 = arith.select %224, %208, %156 : vector<8x32xi1>, vector<8x32xf32>
    %226 = vector.shape_cast %212 : vector<8x1xi1> to vector<8x1xi1>
    %227 = vector.broadcast %226 : vector<8x1xi1> to vector<8x32xi1>
    %228 = arith.select %227, %202, %159 : vector<8x32xi1>, vector<8x32xf32>
    %229 = arith.maximumf %163, %208 : vector<8x32xf32>
    %230 = vector.shape_cast %212 : vector<8x1xi1> to vector<8x1xi1>
    %231 = vector.broadcast %230 : vector<8x1xi1> to vector<8x32xi1>
    %232 = arith.select %231, %229, %163 : vector<8x32xi1>, vector<8x32xf32>
    %c3_i32 = arith.constant 3 : i32
    %233 = arith.addi %19, %c3_i32 : i32
    %234 = tpu.concatenate %215, %225 in 1 : vector<8x32xf32>, vector<8x32xf32> -> vector<8x64xf32>
    %235 = arith.truncf %234 : vector<8x64xf32> to vector<8x64xbf16>
    %cst_38 = arith.constant dense<0.000000e+00> : vector<8x256xf32>
    %236 = tpu.matmul %235, %6, %cst_38 {dimension_numbers = #tpu.dot_dimension_numbers<[1], [0], [0], [1], [0, 0, 1, 1], [], []>} : vector<8x64xbf16>, vector<64x256xbf16>, vector<8x256xf32> -> vector<8x256xf32>
    %237 = arith.index_cast %c3_i32 : i32 to index
    %c0_39 = arith.constant 0 : index
    %c0_40 = arith.constant 0 : index
    %238 = vector.load %arg3[%237, %c0_39, %c0_40] : memref<8x8x128xbf16, #tpu.memory_space<vmem>>, vector<1x8x128xbf16>
    %239 = vector.shape_cast %238 : vector<1x8x128xbf16> to vector<8x128xbf16>
    %240 = vector.extract_strided_slice %236 {offsets = [0, 0], sizes = [8, 128], strides = [1, 1]} : vector<8x256xf32> to vector<8x128xf32>
    %241 = arith.extf %239 : vector<8x128xbf16> to vector<8x128xf32>
    %242 = arith.addf %241, %240 : vector<8x128xf32>
    %c7_i32_41 = arith.constant 7 : i32
    %243 = arith.subi %c7_i32_41, %c3_i32 : i32
    %244 = arith.index_cast %243 : i32 to index
    %c0_42 = arith.constant 0 : index
    %c0_43 = arith.constant 0 : index
    %245 = vector.load %arg4[%244, %c0_42, %c0_43] : memref<8x8x128xbf16, #tpu.memory_space<vmem>>, vector<1x8x128xbf16>
    %246 = vector.shape_cast %245 : vector<1x8x128xbf16> to vector<8x128xbf16>
    %247 = vector.extract_strided_slice %236 {offsets = [0, 128], sizes = [8, 128], strides = [1, 1]} : vector<8x256xf32> to vector<8x128xf32>
    %248 = arith.extf %246 : vector<8x128xbf16> to vector<8x128xf32>
    %249 = arith.addf %248, %247 : vector<8x128xf32>
    %250 = math.tanh %242 : vector<8x128xf32>
    %251 = vector.broadcast %15 : vector<1x128xf32> to vector<8x128xf32>
    %252 = arith.mulf %250, %251 : vector<8x128xf32>
    %253 = vector.broadcast %18 : vector<1x128xf32> to vector<8x128xf32>
    %254 = arith.addf %252, %253 : vector<8x128xf32>
    %255 = math.tanh %249 : vector<8x128xf32>
    %256 = vector.broadcast %15 : vector<1x128xf32> to vector<8x128xf32>
    %257 = arith.mulf %255, %256 : vector<8x128xf32>
    %258 = vector.broadcast %18 : vector<1x128xf32> to vector<8x128xf32>
    %259 = arith.addf %257, %258 : vector<8x128xf32>
    %260 = vector.extract_strided_slice %254 {offsets = [0, 32], sizes = [8, 32], strides = [1, 1]} : vector<8x128xf32> to vector<8x32xf32>
    %261 = arith.mulf %260, %218 : vector<8x32xf32>
    %262 = vector.extract_strided_slice %254 {offsets = [0, 0], sizes = [8, 32], strides = [1, 1]} : vector<8x128xf32> to vector<8x32xf32>
    %263 = vector.extract_strided_slice %254 {offsets = [0, 64], sizes = [8, 32], strides = [1, 1]} : vector<8x128xf32> to vector<8x32xf32>
    %264 = arith.mulf %262, %263 : vector<8x32xf32>
    %265 = arith.addf %261, %264 : vector<8x32xf32>
    %266 = vector.extract_strided_slice %259 {offsets = [0, 32], sizes = [8, 32], strides = [1, 1]} : vector<8x128xf32> to vector<8x32xf32>
    %267 = arith.mulf %266, %228 : vector<8x32xf32>
    %268 = vector.extract_strided_slice %259 {offsets = [0, 0], sizes = [8, 32], strides = [1, 1]} : vector<8x128xf32> to vector<8x32xf32>
    %269 = vector.extract_strided_slice %259 {offsets = [0, 64], sizes = [8, 32], strides = [1, 1]} : vector<8x128xf32> to vector<8x32xf32>
    %270 = arith.mulf %268, %269 : vector<8x32xf32>
    %271 = arith.addf %267, %270 : vector<8x32xf32>
    %272 = vector.extract_strided_slice %254 {offsets = [0, 96], sizes = [8, 32], strides = [1, 1]} : vector<8x128xf32> to vector<8x32xf32>
    %273 = math.tanh %265 : vector<8x32xf32>
    %274 = arith.mulf %272, %273 : vector<8x32xf32>
    %275 = vector.extract_strided_slice %259 {offsets = [0, 96], sizes = [8, 32], strides = [1, 1]} : vector<8x128xf32> to vector<8x32xf32>
    %276 = math.tanh %271 : vector<8x32xf32>
    %277 = arith.mulf %275, %276 : vector<8x32xf32>
    %278 = vector.broadcast %233 : i32 to vector<8x1xi32>
    %279 = arith.cmpi slt, %278, %3 : vector<8x1xi32>
    %280 = vector.broadcast %233 : i32 to vector<8x1xi32>
    %281 = arith.cmpi sge, %280, %5 : vector<8x1xi32>
    %282 = vector.shape_cast %279 : vector<8x1xi1> to vector<8x1xi1>
    %283 = vector.broadcast %282 : vector<8x1xi1> to vector<8x32xi1>
    %284 = arith.select %283, %274, %215 : vector<8x32xi1>, vector<8x32xf32>
    %285 = vector.shape_cast %279 : vector<8x1xi1> to vector<8x1xi1>
    %286 = vector.broadcast %285 : vector<8x1xi1> to vector<8x32xi1>
    %287 = arith.select %286, %265, %218 : vector<8x32xi1>, vector<8x32xf32>
    %288 = arith.maximumf %222, %274 : vector<8x32xf32>
    %289 = vector.shape_cast %279 : vector<8x1xi1> to vector<8x1xi1>
    %290 = vector.broadcast %289 : vector<8x1xi1> to vector<8x32xi1>
    %291 = arith.select %290, %288, %222 : vector<8x32xi1>, vector<8x32xf32>
    %292 = vector.shape_cast %281 : vector<8x1xi1> to vector<8x1xi1>
    %293 = vector.broadcast %292 : vector<8x1xi1> to vector<8x32xi1>
    %294 = arith.select %293, %277, %225 : vector<8x32xi1>, vector<8x32xf32>
    %295 = vector.shape_cast %281 : vector<8x1xi1> to vector<8x1xi1>
    %296 = vector.broadcast %295 : vector<8x1xi1> to vector<8x32xi1>
    %297 = arith.select %296, %271, %228 : vector<8x32xi1>, vector<8x32xf32>
    %298 = arith.maximumf %232, %277 : vector<8x32xf32>
    %299 = vector.shape_cast %281 : vector<8x1xi1> to vector<8x1xi1>
    %300 = vector.broadcast %299 : vector<8x1xi1> to vector<8x32xi1>
    %301 = arith.select %300, %298, %232 : vector<8x32xi1>, vector<8x32xf32>
    %c4_i32 = arith.constant 4 : i32
    %302 = arith.addi %19, %c4_i32 : i32
    %303 = tpu.concatenate %284, %294 in 1 : vector<8x32xf32>, vector<8x32xf32> -> vector<8x64xf32>
    %304 = arith.truncf %303 : vector<8x64xf32> to vector<8x64xbf16>
    %cst_44 = arith.constant dense<0.000000e+00> : vector<8x256xf32>
    %305 = tpu.matmul %304, %6, %cst_44 {dimension_numbers = #tpu.dot_dimension_numbers<[1], [0], [0], [1], [0, 0, 1, 1], [], []>} : vector<8x64xbf16>, vector<64x256xbf16>, vector<8x256xf32> -> vector<8x256xf32>
    %306 = arith.index_cast %c4_i32 : i32 to index
    %c0_45 = arith.constant 0 : index
    %c0_46 = arith.constant 0 : index
    %307 = vector.load %arg3[%306, %c0_45, %c0_46] : memref<8x8x128xbf16, #tpu.memory_space<vmem>>, vector<1x8x128xbf16>
    %308 = vector.shape_cast %307 : vector<1x8x128xbf16> to vector<8x128xbf16>
    %309 = vector.extract_strided_slice %305 {offsets = [0, 0], sizes = [8, 128], strides = [1, 1]} : vector<8x256xf32> to vector<8x128xf32>
    %310 = arith.extf %308 : vector<8x128xbf16> to vector<8x128xf32>
    %311 = arith.addf %310, %309 : vector<8x128xf32>
    %c7_i32_47 = arith.constant 7 : i32
    %312 = arith.subi %c7_i32_47, %c4_i32 : i32
    %313 = arith.index_cast %312 : i32 to index
    %c0_48 = arith.constant 0 : index
    %c0_49 = arith.constant 0 : index
    %314 = vector.load %arg4[%313, %c0_48, %c0_49] : memref<8x8x128xbf16, #tpu.memory_space<vmem>>, vector<1x8x128xbf16>
    %315 = vector.shape_cast %314 : vector<1x8x128xbf16> to vector<8x128xbf16>
    %316 = vector.extract_strided_slice %305 {offsets = [0, 128], sizes = [8, 128], strides = [1, 1]} : vector<8x256xf32> to vector<8x128xf32>
    %317 = arith.extf %315 : vector<8x128xbf16> to vector<8x128xf32>
    %318 = arith.addf %317, %316 : vector<8x128xf32>
    %319 = math.tanh %311 : vector<8x128xf32>
    %320 = vector.broadcast %15 : vector<1x128xf32> to vector<8x128xf32>
    %321 = arith.mulf %319, %320 : vector<8x128xf32>
    %322 = vector.broadcast %18 : vector<1x128xf32> to vector<8x128xf32>
    %323 = arith.addf %321, %322 : vector<8x128xf32>
    %324 = math.tanh %318 : vector<8x128xf32>
    %325 = vector.broadcast %15 : vector<1x128xf32> to vector<8x128xf32>
    %326 = arith.mulf %324, %325 : vector<8x128xf32>
    %327 = vector.broadcast %18 : vector<1x128xf32> to vector<8x128xf32>
    %328 = arith.addf %326, %327 : vector<8x128xf32>
    %329 = vector.extract_strided_slice %323 {offsets = [0, 32], sizes = [8, 32], strides = [1, 1]} : vector<8x128xf32> to vector<8x32xf32>
    %330 = arith.mulf %329, %287 : vector<8x32xf32>
    %331 = vector.extract_strided_slice %323 {offsets = [0, 0], sizes = [8, 32], strides = [1, 1]} : vector<8x128xf32> to vector<8x32xf32>
    %332 = vector.extract_strided_slice %323 {offsets = [0, 64], sizes = [8, 32], strides = [1, 1]} : vector<8x128xf32> to vector<8x32xf32>
    %333 = arith.mulf %331, %332 : vector<8x32xf32>
    %334 = arith.addf %330, %333 : vector<8x32xf32>
    %335 = vector.extract_strided_slice %328 {offsets = [0, 32], sizes = [8, 32], strides = [1, 1]} : vector<8x128xf32> to vector<8x32xf32>
    %336 = arith.mulf %335, %297 : vector<8x32xf32>
    %337 = vector.extract_strided_slice %328 {offsets = [0, 0], sizes = [8, 32], strides = [1, 1]} : vector<8x128xf32> to vector<8x32xf32>
    %338 = vector.extract_strided_slice %328 {offsets = [0, 64], sizes = [8, 32], strides = [1, 1]} : vector<8x128xf32> to vector<8x32xf32>
    %339 = arith.mulf %337, %338 : vector<8x32xf32>
    %340 = arith.addf %336, %339 : vector<8x32xf32>
    %341 = vector.extract_strided_slice %323 {offsets = [0, 96], sizes = [8, 32], strides = [1, 1]} : vector<8x128xf32> to vector<8x32xf32>
    %342 = math.tanh %334 : vector<8x32xf32>
    %343 = arith.mulf %341, %342 : vector<8x32xf32>
    %344 = vector.extract_strided_slice %328 {offsets = [0, 96], sizes = [8, 32], strides = [1, 1]} : vector<8x128xf32> to vector<8x32xf32>
    %345 = math.tanh %340 : vector<8x32xf32>
    %346 = arith.mulf %344, %345 : vector<8x32xf32>
    %347 = vector.broadcast %302 : i32 to vector<8x1xi32>
    %348 = arith.cmpi slt, %347, %3 : vector<8x1xi32>
    %349 = vector.broadcast %302 : i32 to vector<8x1xi32>
    %350 = arith.cmpi sge, %349, %5 : vector<8x1xi32>
    %351 = vector.shape_cast %348 : vector<8x1xi1> to vector<8x1xi1>
    %352 = vector.broadcast %351 : vector<8x1xi1> to vector<8x32xi1>
    %353 = arith.select %352, %343, %284 : vector<8x32xi1>, vector<8x32xf32>
    %354 = vector.shape_cast %348 : vector<8x1xi1> to vector<8x1xi1>
    %355 = vector.broadcast %354 : vector<8x1xi1> to vector<8x32xi1>
    %356 = arith.select %355, %334, %287 : vector<8x32xi1>, vector<8x32xf32>
    %357 = arith.maximumf %291, %343 : vector<8x32xf32>
    %358 = vector.shape_cast %348 : vector<8x1xi1> to vector<8x1xi1>
    %359 = vector.broadcast %358 : vector<8x1xi1> to vector<8x32xi1>
    %360 = arith.select %359, %357, %291 : vector<8x32xi1>, vector<8x32xf32>
    %361 = vector.shape_cast %350 : vector<8x1xi1> to vector<8x1xi1>
    %362 = vector.broadcast %361 : vector<8x1xi1> to vector<8x32xi1>
    %363 = arith.select %362, %346, %294 : vector<8x32xi1>, vector<8x32xf32>
    %364 = vector.shape_cast %350 : vector<8x1xi1> to vector<8x1xi1>
    %365 = vector.broadcast %364 : vector<8x1xi1> to vector<8x32xi1>
    %366 = arith.select %365, %340, %297 : vector<8x32xi1>, vector<8x32xf32>
    %367 = arith.maximumf %301, %346 : vector<8x32xf32>
    %368 = vector.shape_cast %350 : vector<8x1xi1> to vector<8x1xi1>
    %369 = vector.broadcast %368 : vector<8x1xi1> to vector<8x32xi1>
    %370 = arith.select %369, %367, %301 : vector<8x32xi1>, vector<8x32xf32>
    %c5_i32 = arith.constant 5 : i32
    %371 = arith.addi %19, %c5_i32 : i32
    %372 = tpu.concatenate %353, %363 in 1 : vector<8x32xf32>, vector<8x32xf32> -> vector<8x64xf32>
    %373 = arith.truncf %372 : vector<8x64xf32> to vector<8x64xbf16>
    %cst_50 = arith.constant dense<0.000000e+00> : vector<8x256xf32>
    %374 = tpu.matmul %373, %6, %cst_50 {dimension_numbers = #tpu.dot_dimension_numbers<[1], [0], [0], [1], [0, 0, 1, 1], [], []>} : vector<8x64xbf16>, vector<64x256xbf16>, vector<8x256xf32> -> vector<8x256xf32>
    %375 = arith.index_cast %c5_i32 : i32 to index
    %c0_51 = arith.constant 0 : index
    %c0_52 = arith.constant 0 : index
    %376 = vector.load %arg3[%375, %c0_51, %c0_52] : memref<8x8x128xbf16, #tpu.memory_space<vmem>>, vector<1x8x128xbf16>
    %377 = vector.shape_cast %376 : vector<1x8x128xbf16> to vector<8x128xbf16>
    %378 = vector.extract_strided_slice %374 {offsets = [0, 0], sizes = [8, 128], strides = [1, 1]} : vector<8x256xf32> to vector<8x128xf32>
    %379 = arith.extf %377 : vector<8x128xbf16> to vector<8x128xf32>
    %380 = arith.addf %379, %378 : vector<8x128xf32>
    %c7_i32_53 = arith.constant 7 : i32
    %381 = arith.subi %c7_i32_53, %c5_i32 : i32
    %382 = arith.index_cast %381 : i32 to index
    %c0_54 = arith.constant 0 : index
    %c0_55 = arith.constant 0 : index
    %383 = vector.load %arg4[%382, %c0_54, %c0_55] : memref<8x8x128xbf16, #tpu.memory_space<vmem>>, vector<1x8x128xbf16>
    %384 = vector.shape_cast %383 : vector<1x8x128xbf16> to vector<8x128xbf16>
    %385 = vector.extract_strided_slice %374 {offsets = [0, 128], sizes = [8, 128], strides = [1, 1]} : vector<8x256xf32> to vector<8x128xf32>
    %386 = arith.extf %384 : vector<8x128xbf16> to vector<8x128xf32>
    %387 = arith.addf %386, %385 : vector<8x128xf32>
    %388 = math.tanh %380 : vector<8x128xf32>
    %389 = vector.broadcast %15 : vector<1x128xf32> to vector<8x128xf32>
    %390 = arith.mulf %388, %389 : vector<8x128xf32>
    %391 = vector.broadcast %18 : vector<1x128xf32> to vector<8x128xf32>
    %392 = arith.addf %390, %391 : vector<8x128xf32>
    %393 = math.tanh %387 : vector<8x128xf32>
    %394 = vector.broadcast %15 : vector<1x128xf32> to vector<8x128xf32>
    %395 = arith.mulf %393, %394 : vector<8x128xf32>
    %396 = vector.broadcast %18 : vector<1x128xf32> to vector<8x128xf32>
    %397 = arith.addf %395, %396 : vector<8x128xf32>
    %398 = vector.extract_strided_slice %392 {offsets = [0, 32], sizes = [8, 32], strides = [1, 1]} : vector<8x128xf32> to vector<8x32xf32>
    %399 = arith.mulf %398, %356 : vector<8x32xf32>
    %400 = vector.extract_strided_slice %392 {offsets = [0, 0], sizes = [8, 32], strides = [1, 1]} : vector<8x128xf32> to vector<8x32xf32>
    %401 = vector.extract_strided_slice %392 {offsets = [0, 64], sizes = [8, 32], strides = [1, 1]} : vector<8x128xf32> to vector<8x32xf32>
    %402 = arith.mulf %400, %401 : vector<8x32xf32>
    %403 = arith.addf %399, %402 : vector<8x32xf32>
    %404 = vector.extract_strided_slice %397 {offsets = [0, 32], sizes = [8, 32], strides = [1, 1]} : vector<8x128xf32> to vector<8x32xf32>
    %405 = arith.mulf %404, %366 : vector<8x32xf32>
    %406 = vector.extract_strided_slice %397 {offsets = [0, 0], sizes = [8, 32], strides = [1, 1]} : vector<8x128xf32> to vector<8x32xf32>
    %407 = vector.extract_strided_slice %397 {offsets = [0, 64], sizes = [8, 32], strides = [1, 1]} : vector<8x128xf32> to vector<8x32xf32>
    %408 = arith.mulf %406, %407 : vector<8x32xf32>
    %409 = arith.addf %405, %408 : vector<8x32xf32>
    %410 = vector.extract_strided_slice %392 {offsets = [0, 96], sizes = [8, 32], strides = [1, 1]} : vector<8x128xf32> to vector<8x32xf32>
    %411 = math.tanh %403 : vector<8x32xf32>
    %412 = arith.mulf %410, %411 : vector<8x32xf32>
    %413 = vector.extract_strided_slice %397 {offsets = [0, 96], sizes = [8, 32], strides = [1, 1]} : vector<8x128xf32> to vector<8x32xf32>
    %414 = math.tanh %409 : vector<8x32xf32>
    %415 = arith.mulf %413, %414 : vector<8x32xf32>
    %416 = vector.broadcast %371 : i32 to vector<8x1xi32>
    %417 = arith.cmpi slt, %416, %3 : vector<8x1xi32>
    %418 = vector.broadcast %371 : i32 to vector<8x1xi32>
    %419 = arith.cmpi sge, %418, %5 : vector<8x1xi32>
    %420 = vector.shape_cast %417 : vector<8x1xi1> to vector<8x1xi1>
    %421 = vector.broadcast %420 : vector<8x1xi1> to vector<8x32xi1>
    %422 = arith.select %421, %412, %353 : vector<8x32xi1>, vector<8x32xf32>
    %423 = vector.shape_cast %417 : vector<8x1xi1> to vector<8x1xi1>
    %424 = vector.broadcast %423 : vector<8x1xi1> to vector<8x32xi1>
    %425 = arith.select %424, %403, %356 : vector<8x32xi1>, vector<8x32xf32>
    %426 = arith.maximumf %360, %412 : vector<8x32xf32>
    %427 = vector.shape_cast %417 : vector<8x1xi1> to vector<8x1xi1>
    %428 = vector.broadcast %427 : vector<8x1xi1> to vector<8x32xi1>
    %429 = arith.select %428, %426, %360 : vector<8x32xi1>, vector<8x32xf32>
    %430 = vector.shape_cast %419 : vector<8x1xi1> to vector<8x1xi1>
    %431 = vector.broadcast %430 : vector<8x1xi1> to vector<8x32xi1>
    %432 = arith.select %431, %415, %363 : vector<8x32xi1>, vector<8x32xf32>
    %433 = vector.shape_cast %419 : vector<8x1xi1> to vector<8x1xi1>
    %434 = vector.broadcast %433 : vector<8x1xi1> to vector<8x32xi1>
    %435 = arith.select %434, %409, %366 : vector<8x32xi1>, vector<8x32xf32>
    %436 = arith.maximumf %370, %415 : vector<8x32xf32>
    %437 = vector.shape_cast %419 : vector<8x1xi1> to vector<8x1xi1>
    %438 = vector.broadcast %437 : vector<8x1xi1> to vector<8x32xi1>
    %439 = arith.select %438, %436, %370 : vector<8x32xi1>, vector<8x32xf32>
    %c6_i32 = arith.constant 6 : i32
    %440 = arith.addi %19, %c6_i32 : i32
    %441 = tpu.concatenate %422, %432 in 1 : vector<8x32xf32>, vector<8x32xf32> -> vector<8x64xf32>
    %442 = arith.truncf %441 : vector<8x64xf32> to vector<8x64xbf16>
    %cst_56 = arith.constant dense<0.000000e+00> : vector<8x256xf32>
    %443 = tpu.matmul %442, %6, %cst_56 {dimension_numbers = #tpu.dot_dimension_numbers<[1], [0], [0], [1], [0, 0, 1, 1], [], []>} : vector<8x64xbf16>, vector<64x256xbf16>, vector<8x256xf32> -> vector<8x256xf32>
    %444 = arith.index_cast %c6_i32 : i32 to index
    %c0_57 = arith.constant 0 : index
    %c0_58 = arith.constant 0 : index
    %445 = vector.load %arg3[%444, %c0_57, %c0_58] : memref<8x8x128xbf16, #tpu.memory_space<vmem>>, vector<1x8x128xbf16>
    %446 = vector.shape_cast %445 : vector<1x8x128xbf16> to vector<8x128xbf16>
    %447 = vector.extract_strided_slice %443 {offsets = [0, 0], sizes = [8, 128], strides = [1, 1]} : vector<8x256xf32> to vector<8x128xf32>
    %448 = arith.extf %446 : vector<8x128xbf16> to vector<8x128xf32>
    %449 = arith.addf %448, %447 : vector<8x128xf32>
    %c7_i32_59 = arith.constant 7 : i32
    %450 = arith.subi %c7_i32_59, %c6_i32 : i32
    %451 = arith.index_cast %450 : i32 to index
    %c0_60 = arith.constant 0 : index
    %c0_61 = arith.constant 0 : index
    %452 = vector.load %arg4[%451, %c0_60, %c0_61] : memref<8x8x128xbf16, #tpu.memory_space<vmem>>, vector<1x8x128xbf16>
    %453 = vector.shape_cast %452 : vector<1x8x128xbf16> to vector<8x128xbf16>
    %454 = vector.extract_strided_slice %443 {offsets = [0, 128], sizes = [8, 128], strides = [1, 1]} : vector<8x256xf32> to vector<8x128xf32>
    %455 = arith.extf %453 : vector<8x128xbf16> to vector<8x128xf32>
    %456 = arith.addf %455, %454 : vector<8x128xf32>
    %457 = math.tanh %449 : vector<8x128xf32>
    %458 = vector.broadcast %15 : vector<1x128xf32> to vector<8x128xf32>
    %459 = arith.mulf %457, %458 : vector<8x128xf32>
    %460 = vector.broadcast %18 : vector<1x128xf32> to vector<8x128xf32>
    %461 = arith.addf %459, %460 : vector<8x128xf32>
    %462 = math.tanh %456 : vector<8x128xf32>
    %463 = vector.broadcast %15 : vector<1x128xf32> to vector<8x128xf32>
    %464 = arith.mulf %462, %463 : vector<8x128xf32>
    %465 = vector.broadcast %18 : vector<1x128xf32> to vector<8x128xf32>
    %466 = arith.addf %464, %465 : vector<8x128xf32>
    %467 = vector.extract_strided_slice %461 {offsets = [0, 32], sizes = [8, 32], strides = [1, 1]} : vector<8x128xf32> to vector<8x32xf32>
    %468 = arith.mulf %467, %425 : vector<8x32xf32>
    %469 = vector.extract_strided_slice %461 {offsets = [0, 0], sizes = [8, 32], strides = [1, 1]} : vector<8x128xf32> to vector<8x32xf32>
    %470 = vector.extract_strided_slice %461 {offsets = [0, 64], sizes = [8, 32], strides = [1, 1]} : vector<8x128xf32> to vector<8x32xf32>
    %471 = arith.mulf %469, %470 : vector<8x32xf32>
    %472 = arith.addf %468, %471 : vector<8x32xf32>
    %473 = vector.extract_strided_slice %466 {offsets = [0, 32], sizes = [8, 32], strides = [1, 1]} : vector<8x128xf32> to vector<8x32xf32>
    %474 = arith.mulf %473, %435 : vector<8x32xf32>
    %475 = vector.extract_strided_slice %466 {offsets = [0, 0], sizes = [8, 32], strides = [1, 1]} : vector<8x128xf32> to vector<8x32xf32>
    %476 = vector.extract_strided_slice %466 {offsets = [0, 64], sizes = [8, 32], strides = [1, 1]} : vector<8x128xf32> to vector<8x32xf32>
    %477 = arith.mulf %475, %476 : vector<8x32xf32>
    %478 = arith.addf %474, %477 : vector<8x32xf32>
    %479 = vector.extract_strided_slice %461 {offsets = [0, 96], sizes = [8, 32], strides = [1, 1]} : vector<8x128xf32> to vector<8x32xf32>
    %480 = math.tanh %472 : vector<8x32xf32>
    %481 = arith.mulf %479, %480 : vector<8x32xf32>
    %482 = vector.extract_strided_slice %466 {offsets = [0, 96], sizes = [8, 32], strides = [1, 1]} : vector<8x128xf32> to vector<8x32xf32>
    %483 = math.tanh %478 : vector<8x32xf32>
    %484 = arith.mulf %482, %483 : vector<8x32xf32>
    %485 = vector.broadcast %440 : i32 to vector<8x1xi32>
    %486 = arith.cmpi slt, %485, %3 : vector<8x1xi32>
    %487 = vector.broadcast %440 : i32 to vector<8x1xi32>
    %488 = arith.cmpi sge, %487, %5 : vector<8x1xi32>
    %489 = vector.shape_cast %486 : vector<8x1xi1> to vector<8x1xi1>
    %490 = vector.broadcast %489 : vector<8x1xi1> to vector<8x32xi1>
    %491 = arith.select %490, %481, %422 : vector<8x32xi1>, vector<8x32xf32>
    %492 = vector.shape_cast %486 : vector<8x1xi1> to vector<8x1xi1>
    %493 = vector.broadcast %492 : vector<8x1xi1> to vector<8x32xi1>
    %494 = arith.select %493, %472, %425 : vector<8x32xi1>, vector<8x32xf32>
    %495 = arith.maximumf %429, %481 : vector<8x32xf32>
    %496 = vector.shape_cast %486 : vector<8x1xi1> to vector<8x1xi1>
    %497 = vector.broadcast %496 : vector<8x1xi1> to vector<8x32xi1>
    %498 = arith.select %497, %495, %429 : vector<8x32xi1>, vector<8x32xf32>
    %499 = vector.shape_cast %488 : vector<8x1xi1> to vector<8x1xi1>
    %500 = vector.broadcast %499 : vector<8x1xi1> to vector<8x32xi1>
    %501 = arith.select %500, %484, %432 : vector<8x32xi1>, vector<8x32xf32>
    %502 = vector.shape_cast %488 : vector<8x1xi1> to vector<8x1xi1>
    %503 = vector.broadcast %502 : vector<8x1xi1> to vector<8x32xi1>
    %504 = arith.select %503, %478, %435 : vector<8x32xi1>, vector<8x32xf32>
    %505 = arith.maximumf %439, %484 : vector<8x32xf32>
    %506 = vector.shape_cast %488 : vector<8x1xi1> to vector<8x1xi1>
    %507 = vector.broadcast %506 : vector<8x1xi1> to vector<8x32xi1>
    %508 = arith.select %507, %505, %439 : vector<8x32xi1>, vector<8x32xf32>
    %c7_i32_62 = arith.constant 7 : i32
    %509 = arith.addi %19, %c7_i32_62 : i32
    %510 = tpu.concatenate %491, %501 in 1 : vector<8x32xf32>, vector<8x32xf32> -> vector<8x64xf32>
    %511 = arith.truncf %510 : vector<8x64xf32> to vector<8x64xbf16>
    %cst_63 = arith.constant dense<0.000000e+00> : vector<8x256xf32>
    %512 = tpu.matmul %511, %6, %cst_63 {dimension_numbers = #tpu.dot_dimension_numbers<[1], [0], [0], [1], [0, 0, 1, 1], [], []>} : vector<8x64xbf16>, vector<64x256xbf16>, vector<8x256xf32> -> vector<8x256xf32>
    %513 = arith.index_cast %c7_i32_62 : i32 to index
    %c0_64 = arith.constant 0 : index
    %c0_65 = arith.constant 0 : index
    %514 = vector.load %arg3[%513, %c0_64, %c0_65] : memref<8x8x128xbf16, #tpu.memory_space<vmem>>, vector<1x8x128xbf16>
    %515 = vector.shape_cast %514 : vector<1x8x128xbf16> to vector<8x128xbf16>
    %516 = vector.extract_strided_slice %512 {offsets = [0, 0], sizes = [8, 128], strides = [1, 1]} : vector<8x256xf32> to vector<8x128xf32>
    %517 = arith.extf %515 : vector<8x128xbf16> to vector<8x128xf32>
    %518 = arith.addf %517, %516 : vector<8x128xf32>
    %c7_i32_66 = arith.constant 7 : i32
    %519 = arith.subi %c7_i32_66, %c7_i32_62 : i32
    %520 = arith.index_cast %519 : i32 to index
    %c0_67 = arith.constant 0 : index
    %c0_68 = arith.constant 0 : index
    %521 = vector.load %arg4[%520, %c0_67, %c0_68] : memref<8x8x128xbf16, #tpu.memory_space<vmem>>, vector<1x8x128xbf16>
    %522 = vector.shape_cast %521 : vector<1x8x128xbf16> to vector<8x128xbf16>
    %523 = vector.extract_strided_slice %512 {offsets = [0, 128], sizes = [8, 128], strides = [1, 1]} : vector<8x256xf32> to vector<8x128xf32>
    %524 = arith.extf %522 : vector<8x128xbf16> to vector<8x128xf32>
    %525 = arith.addf %524, %523 : vector<8x128xf32>
    %526 = math.tanh %518 : vector<8x128xf32>
    %527 = vector.broadcast %15 : vector<1x128xf32> to vector<8x128xf32>
    %528 = arith.mulf %526, %527 : vector<8x128xf32>
    %529 = vector.broadcast %18 : vector<1x128xf32> to vector<8x128xf32>
    %530 = arith.addf %528, %529 : vector<8x128xf32>
    %531 = math.tanh %525 : vector<8x128xf32>
    %532 = vector.broadcast %15 : vector<1x128xf32> to vector<8x128xf32>
    %533 = arith.mulf %531, %532 : vector<8x128xf32>
    %534 = vector.broadcast %18 : vector<1x128xf32> to vector<8x128xf32>
    %535 = arith.addf %533, %534 : vector<8x128xf32>
    %536 = vector.extract_strided_slice %530 {offsets = [0, 32], sizes = [8, 32], strides = [1, 1]} : vector<8x128xf32> to vector<8x32xf32>
    %537 = arith.mulf %536, %494 : vector<8x32xf32>
    %538 = vector.extract_strided_slice %530 {offsets = [0, 0], sizes = [8, 32], strides = [1, 1]} : vector<8x128xf32> to vector<8x32xf32>
    %539 = vector.extract_strided_slice %530 {offsets = [0, 64], sizes = [8, 32], strides = [1, 1]} : vector<8x128xf32> to vector<8x32xf32>
    %540 = arith.mulf %538, %539 : vector<8x32xf32>
    %541 = arith.addf %537, %540 : vector<8x32xf32>
    %542 = vector.extract_strided_slice %535 {offsets = [0, 32], sizes = [8, 32], strides = [1, 1]} : vector<8x128xf32> to vector<8x32xf32>
    %543 = arith.mulf %542, %504 : vector<8x32xf32>
    %544 = vector.extract_strided_slice %535 {offsets = [0, 0], sizes = [8, 32], strides = [1, 1]} : vector<8x128xf32> to vector<8x32xf32>
    %545 = vector.extract_strided_slice %535 {offsets = [0, 64], sizes = [8, 32], strides = [1, 1]} : vector<8x128xf32> to vector<8x32xf32>
    %546 = arith.mulf %544, %545 : vector<8x32xf32>
    %547 = arith.addf %543, %546 : vector<8x32xf32>
    %548 = vector.extract_strided_slice %530 {offsets = [0, 96], sizes = [8, 32], strides = [1, 1]} : vector<8x128xf32> to vector<8x32xf32>
    %549 = math.tanh %541 : vector<8x32xf32>
    %550 = arith.mulf %548, %549 : vector<8x32xf32>
    %551 = vector.extract_strided_slice %535 {offsets = [0, 96], sizes = [8, 32], strides = [1, 1]} : vector<8x128xf32> to vector<8x32xf32>
    %552 = math.tanh %547 : vector<8x32xf32>
    %553 = arith.mulf %551, %552 : vector<8x32xf32>
    %554 = vector.broadcast %509 : i32 to vector<8x1xi32>
    %555 = arith.cmpi slt, %554, %3 : vector<8x1xi32>
    %556 = vector.broadcast %509 : i32 to vector<8x1xi32>
    %557 = arith.cmpi sge, %556, %5 : vector<8x1xi32>
    %558 = vector.shape_cast %555 : vector<8x1xi1> to vector<8x1xi1>
    %559 = vector.broadcast %558 : vector<8x1xi1> to vector<8x32xi1>
    %560 = arith.select %559, %550, %491 : vector<8x32xi1>, vector<8x32xf32>
    %561 = vector.shape_cast %555 : vector<8x1xi1> to vector<8x1xi1>
    %562 = vector.broadcast %561 : vector<8x1xi1> to vector<8x32xi1>
    %563 = arith.select %562, %541, %494 : vector<8x32xi1>, vector<8x32xf32>
    %564 = arith.maximumf %498, %550 : vector<8x32xf32>
    %565 = vector.shape_cast %555 : vector<8x1xi1> to vector<8x1xi1>
    %566 = vector.broadcast %565 : vector<8x1xi1> to vector<8x32xi1>
    %567 = arith.select %566, %564, %498 : vector<8x32xi1>, vector<8x32xf32>
    %568 = vector.shape_cast %557 : vector<8x1xi1> to vector<8x1xi1>
    %569 = vector.broadcast %568 : vector<8x1xi1> to vector<8x32xi1>
    %570 = arith.select %569, %553, %501 : vector<8x32xi1>, vector<8x32xf32>
    %571 = vector.shape_cast %557 : vector<8x1xi1> to vector<8x1xi1>
    %572 = vector.broadcast %571 : vector<8x1xi1> to vector<8x32xi1>
    %573 = arith.select %572, %547, %504 : vector<8x32xi1>, vector<8x32xf32>
    %574 = arith.maximumf %508, %553 : vector<8x32xf32>
    %575 = vector.shape_cast %557 : vector<8x1xi1> to vector<8x1xi1>
    %576 = vector.broadcast %575 : vector<8x1xi1> to vector<8x32xi1>
    %577 = arith.select %576, %574, %508 : vector<8x32xi1>, vector<8x32xf32>
    %c8_i32_69 = arith.constant 8 : i32
    %c0_70 = arith.constant 0 : index
    %c0_71 = arith.constant 0 : index
    %578 = vector.load %arg7[%c0_70, %c0_71] : memref<8x32xf32, #tpu.memory_space<vmem>>, vector<8x32xf32>
    tpu.vector_store %arg7[%c0_70, %c0_71], %560 {strides = array<i32>} : memref<8x32xf32, #tpu.memory_space<vmem>>, vector<8x32xf32>,
    %c0_72 = arith.constant 0 : index
    %c0_73 = arith.constant 0 : index
    %579 = vector.load %arg8[%c0_72, %c0_73] : memref<8x32xf32, #tpu.memory_space<vmem>>, vector<8x32xf32>
    tpu.vector_store %arg8[%c0_72, %c0_73], %570 {strides = array<i32>} : memref<8x32xf32, #tpu.memory_space<vmem>>, vector<8x32xf32>,
    %c0_74 = arith.constant 0 : index
    %c0_75 = arith.constant 0 : index
    %580 = vector.load %arg9[%c0_74, %c0_75] : memref<8x32xf32, #tpu.memory_space<vmem>>, vector<8x32xf32>
    tpu.vector_store %arg9[%c0_74, %c0_75], %563 {strides = array<i32>} : memref<8x32xf32, #tpu.memory_space<vmem>>, vector<8x32xf32>,
    %c0_76 = arith.constant 0 : index
    %c0_77 = arith.constant 0 : index
    %581 = vector.load %arg10[%c0_76, %c0_77] : memref<8x32xf32, #tpu.memory_space<vmem>>, vector<8x32xf32>
    tpu.vector_store %arg10[%c0_76, %c0_77], %573 {strides = array<i32>} : memref<8x32xf32, #tpu.memory_space<vmem>>, vector<8x32xf32>,
    %c0_78 = arith.constant 0 : index
    %c0_79 = arith.constant 0 : index
    %582 = vector.load %arg11[%c0_78, %c0_79] : memref<8x32xf32, #tpu.memory_space<vmem>>, vector<8x32xf32>
    tpu.vector_store %arg11[%c0_78, %c0_79], %567 {strides = array<i32>} : memref<8x32xf32, #tpu.memory_space<vmem>>, vector<8x32xf32>,
    %c0_80 = arith.constant 0 : index
    %c0_81 = arith.constant 0 : index
    %583 = vector.load %arg12[%c0_80, %c0_81] : memref<8x32xf32, #tpu.memory_space<vmem>>, vector<8x32xf32>
    tpu.vector_store %arg12[%c0_80, %c0_81], %577 {strides = array<i32>} : memref<8x32xf32, #tpu.memory_space<vmem>>, vector<8x32xf32>,
    %c0_i32_82 = arith.constant 0 : i32
    %584 = arith.cmpi eq, %arg1, %c0_i32_82 : i32
    %585 = arith.extui %584 : i1 to i32
    %c0_i32_83 = arith.constant 0 : i32
    %586 = arith.cmpi ne, %585, %c0_i32_83 : i32
    scf.if %586 {
      %587 = tpu.concatenate %567, %577 in 1 : vector<8x32xf32>, vector<8x32xf32> -> vector<8x64xf32>
      %c0_84 = arith.constant 0 : index
      %c0_85 = arith.constant 0 : index
      %588 = vector.load %arg6[%c0_84, %c0_85] : memref<8x64xf32, #tpu.memory_space<vmem>>, vector<8x64xf32>
      tpu.vector_store %arg6[%c0_84, %c0_85], %587 {strides = array<i32>} : memref<8x64xf32, #tpu.memory_space<vmem>>, vector<8x64xf32>,
    } else {
    }
    return
  }
  func.func @transform_0(%arg0: i32, %arg1: i32) -> (i32, i32) {
    %c0_i32 = arith.constant 0 : i32
    %c0_i32_0 = arith.constant 0 : i32
    return %arg0, %c0_i32 : i32, i32
  }
  func.func @transform_1(%arg0: i32, %arg1: i32) -> (i32, i32, i32) {
    %c0_i32 = arith.constant 0 : i32
    %c0_i32_0 = arith.constant 0 : i32
    return %arg1, %arg0, %c0_i32 : i32, i32, i32
  }
  func.func @transform_2(%arg0: i32, %arg1: i32) -> (i32, i32, i32) {
    %c0_i32 = arith.constant 0 : i32
    %0 = arith.subi %c0_i32, %arg1 : i32
    %c1_i32 = arith.constant 1 : i32
    %c0_i32_0 = arith.constant 0 : i32
    return %0, %arg0, %c1_i32 : i32, i32, i32
  }
  func.func @transform_3(%arg0: i32, %arg1: i32) -> (i32, i32) {
    %c0_i32 = arith.constant 0 : i32
    %c0_i32_0 = arith.constant 0 : i32
    %c0_i32_1 = arith.constant 0 : i32
    return %c0_i32, %c0_i32_0 : i32, i32
  }
  func.func @transform_4(%arg0: i32, %arg1: i32) -> (i32, i32) {
    %c0_i32 = arith.constant 0 : i32
    %c0_i32_0 = arith.constant 0 : i32
    return %arg0, %c0_i32 : i32, i32
  }
}

</mosaic_0001>

<bundles_post_ra>
// kernel: tpu_custom_call.1
= control target key start
LH: loop header
LB: loop body
LE: loop exit
PB: predicated region body
PF: predicated region fallthrough
CT: control target
= control target key end

     0   :  { %9 = vsyncpa [#allocation9], 0  ;;  %s2203_s0 = inlined_call_operand.vmem [shape: s32[8,1], index: 0, kind: input, shape index: {}]   ;;  %s2204_s1 = inlined_call_operand.hbm [shape: bf16[8,8,256], index: 1, kind: input, shape index: {}]   ;;  %s2205_s2 = inlined_call_operand.hbm [shape: bf16[8,8,256], index: 2, kind: input, shape index: {}]   ;;  %s2206_s3 = inlined_call_operand.hbm [shape: bf16[64,256], index: 3, kind: input, shape index: {}]   ;;  %s2207_s4 = inlined_call_operand.hbm [shape: f32[8,64], index: 4, kind: output, shape index: {}]  }
   0x1   :  { %10 = vsyncpa [#allocation12], 0 }
   0x2   :  { %11 = vsyncpa [#allocation10], 0  ;;  %s1259_s17 = scalar_lea.hbm %s2205_s2, 64  ;;  %s1474_s18 = smov [#allocation11]  }
   0x3   :  { %s37_s19 = sshll.u32 %s1474_s18, 4  ;;  %s1475_s20 = smov [#allocation8]   ;;  %s38_s19 = int_to_ptr.vmem [resolvable:$true] %s37_s19 }
   0x4   :  { %s19_s21 = sshll.u32 %s1475_s20, 4  ;;  %s1395_s22 = scalar_lea.vmem %s38_s19, 512  ;;  %s20_s21 = int_to_ptr.vmem [resolvable:$true] %s19_s21 }
   0x5   :  { %p1396_p0 = scmp.ne.s32.totalorder %s38_s19, %s1395_s22  ;;  %p1400_p1 = scmp.lt.s32.totalorder %s38_s19, %s38_s19 }
   0x6   :  { %p1401_p2 = scmp.lt.s32.totalorder %s1395_s22, %s1395_s22 }
   0x8   :  { %p1402_p3 = por %p1401_p2, %p1400_p1 }
   0xa   :  { %p1403_p4 = pnand %p1402_p3, %p1396_p0 }
   0xc   :  { %1406 = shalt.err (!%p1403_p4)
}
   0xd   :  { %s1476_s23 = smov 128   ;;  %s1477_s24 = smov 64  }
   0xe   :  { %s1478_s25 = smov 4   ;;  %s1416_s26 = scalar_lea.vmem %s20_s21, 512 }
   0xf   :  { %43 = dma.hbm_to_vmem [thread:$0]  %s1259_s17, 512, %s38_s19, [#allocation12], %s1476_s23, %s1477_s24, %s1478_s25  }
  0x10   :  { %p1417_p5 = scmp.ne.s32.totalorder %s20_s21, %s1416_s26  ;;  %p1421_p6 = scmp.lt.s32.totalorder %s20_s21, %s20_s21 }
  0x11   :  { %p1422_p7 = scmp.lt.s32.totalorder %s1416_s26, %s1416_s26 }
  0x13   :  { %p1423_p8 = por %p1422_p7, %p1421_p6 }
  0x15   :  { %p1424_p9 = pnand %p1423_p8, %p1417_p5 }
  0x17   :  { %1427 = shalt.err (!%p1424_p9)
}
  0x18   :  { %25 = dma.hbm_to_vmem [thread:$0]  %s2204_s1, 512, %s20_s21, [#allocation9], %s1476_s23, %s1477_s24, %s1478_s25  }
  0x19   :  { %s1479_s28 = smov [#allocation13]  }
  0x1a   :  { %s49_s29 = sshll.u32 %s1479_s28, 4  ;;  %s50_s29 = int_to_ptr.vmem [resolvable:$true] %s49_s29 }
  0x1b   :  { %s1436_s30 = scalar_lea.vmem %s50_s29, 1024  ;;  %p1441_p11 = scmp.lt.s32.totalorder %s50_s29, %s50_s29 }
  0x1c   :  { %p1437_p10 = scmp.ne.s32.totalorder %s50_s29, %s1436_s30  ;;  %p1442_p12 = scmp.lt.s32.totalorder %s1436_s30, %s1436_s30 }
  0x1e   :  { %p1443_p13 = por %p1442_p12, %p1441_p11 }
  0x20   :  { %p1444_p0 = pnand %p1443_p13, %p1437_p10 }
  0x22   :  { %1447 = shalt.err (!%p1444_p0)
}
  0x23   :  { %s1480_s5 = smov 8  }
  0x24   :  { %55 = dma.hbm_to_vmem [thread:$0]  %s2206_s3, 1024, %s50_s29, [#allocation12], %s1476_s23, %s1476_s23, %s1480_s5  }
  0x25   :  { %1468 = dma.done.wait [#allocation9], 512  }
  0x26   :  { %1469 = vsyncadd [#allocation9], 4294966784 }
  0x27   :  { %1470 = dma.done.wait [#allocation12], 1536  }
  0x28   :  { %1471 = vsyncadd [#allocation12], 4294965760  ;;  %vm72_vm0 = vcmask 261120   ;;  %v1481_v0 = vmov 0.0   ;;  %v1482_v1 = vmov 0   ;;  %s1483_s1 = smov 32   ;;  %v89_v20 = vlaneseq }
  0x29   :  { %74 = vst.msk [vmem:[#allocation3] sm:$0xff] %vm72_vm0, %v1481_v0  ;;  %73 = vst.msk [vmem:[#allocation2] sm:$0xff] %vm72_vm0, %v1481_v0  ;;  %186 = vmatprep.mubr.bf16.mxu0 %v1482_v1  ;;  %1306 = vset.pattern.permute.xlu1 %v1482_v1  ;;  %v1532_v2 = vld [vmem:[#allocation13 + $0x34] ss:$8 sps:$4 sm:$0xff]   ;;  %v1536_v4 = vld [vmem:[#allocation13 + $0x30] ss:$8 sps:$4 sm:$0xff]  }
  0x2a   :  { %75 = vst.msk [vmem:[#allocation4] sm:$0xff] %vm72_vm0, %v1481_v0  ;;  %76 = vst.msk [vmem:[#allocation5] sm:$0xff] %vm72_vm0, %v1481_v0  ;;  %1307 = vset.pattern.permute.xlu0 %v1482_v1  ;;  %332 = vmatprep.mubr.bf16.mxu1 %v1482_v1  ;;  %v1541_v5 = vld [vmem:[#allocation13 + $0x24] ss:$8 sps:$4 sm:$0xff]   ;;  %v1544_v6 = vld [vmem:[#allocation13 + $0x20] ss:$8 sps:$4 sm:$0xff]  }
  0x2b   :  { %162 = vmatprep.subr.bf16.mxu0 %v1532_v2  ;;  %308 = vmatprep.subr.bf16.mxu1 %v1532_v2  ;;  %v1548_v7 = vld [vmem:[#allocation13 + $0x14] ss:$8 sps:$4 sm:$0xff]   ;;  %v1553_v8 = vld [vmem:[#allocation13 + $0x10] ss:$8 sps:$4 sm:$0xff]   ;;  %v1556_v9 = vld [vmem:[#allocation13 + $0x4] ss:$8 sps:$4 sm:$0xff]  }
  0x2c   :  { %163 = vmatpush1.bf16.msra.mxu0 %v1536_v4  ;;  %309 = vmatpush1.bf16.msra.mxu1 %v1536_v4  ;;  %v1561_v10 = vld [vmem:[#allocation13] ss:$8 sps:$4 sm:$0xff]   ;;  %vm2208_vm1 = vcmask 523264   ;;  %v1583_v16 = vld [vmem:[#allocation11 + $0x18] sm:$0xff]   ;;  %v90_v25 = vand.u32 127, %v89_v20  ;;  %v1484_v27 = vmov 0.5  }
  0x2d   :  { %164 = vmatprep.subr.bf16.mxu0 %v1541_v5  ;;  %310 = vmatprep.subr.bf16.mxu1 %v1541_v5  ;;  %v1581_v15 = vld [vmem:[#allocation8] sm:$0xff]   ;;  %v200_v18 = vunpack.c.h.bf16 %v1583_v16  ;;  %v1602_v38 = vld [vmem:[%s2203_s0] sm:$0xff]  ;;  %s1485_s9 = smov 96  }
  0x2e   :  { %v196_v17 = vunpack.c.l.bf16 %v1581_v15  ;;  %vm91_vm2 = vcmp.ge.s32.totalorder %v90_v25, 64  ;;  %vm92_vm3 = vcmp.lt.s32.totalorder %v90_v25, 96  ;;  %v1605_v39 = vsub.s32 8, %v1602_v38 }
  0x2f   :  { %vm93_vm4 = vmand %vm91_vm2, %vm92_vm3  ;;  %vm1269_vm5 = vcmp.gt.s32.totalorder %v1602_v38, 0  ;;  %vm1272_vm9 = vcmp.gt.s32.totalorder %v1602_v38, 1  ;;  %vm1275_vm13 = vcmp.gt.s32.totalorder %v1602_v38, 2  ;;  %vm1278_vm3 = vcmp.gt.s32.totalorder %v1602_v38, 3 }
  0x30   :  { %v1534_v3 = vld [vmem:[#allocation3] sm:$0xff]  ;;  %165 = vmatpush1.bf16.msra.mxu0 %v1544_v6  ;;  %311 = vmatpush1.bf16.msra.mxu1 %v1544_v6  ;;  %v97_v11 = vld [vmem:[#allocation2] sm:$0xff]  ;;  %v1587_v28 = vsel %vm93_vm4, 1.0, %v1484_v27  ;;  %v1589_v30 = vsel %vm93_vm4, 0.0, %v1484_v27  ;;  %vm1270_vm6 = vcmp.le.s32.totalorder %v1605_v39, 0  ;;  %v253_v44 = vsel %vm1269_vm5, 1, %v1482_v1 }
  0x31   :  { %104 = vrot.lane.b32.xlu0 %v1534_v3, %s1483_s1  ;;  %166 = vmatprep.subr.bf16.mxu0 %v1548_v7  ;;  %v100_v36 = vld [vmem:[#allocation5] sm:$0xff]  ;;  %v99_v37 = vld [vmem:[#allocation4] sm:$0xff]  ;;  %v270_v45 = vsel %vm1270_vm6, 1, %v1482_v1  ;;  %vm1273_vm10 = vcmp.le.s32.totalorder %v1605_v39, 1  ;;  %vm1276_vm14 = vcmp.le.s32.totalorder %v1605_v39, 2  ;;  %vm1279_vm4 = vcmp.le.s32.totalorder %v1605_v39, 3 }
  0x32   :  { %312 = vmatprep.subr.bf16.mxu1 %v1548_v7 }
  0x34   :  { %167 = vmatpush1.bf16.msra.mxu0 %v1553_v8  ;;  %313 = vmatpush1.bf16.msra.mxu1 %v1553_v8 }
  0x35   :  { %168 = vmatprep.subr.bf16.mxu0 %v1556_v9  ;;  %314 = vmatprep.subr.bf16.mxu1 %v1556_v9 }
  0x38   :  { %169 = vmatpush1.bf16.msra.mxu0 %v1561_v10  ;;  %315 = vmatpush1.bf16.msra.mxu1 %v1561_v10 }
  0x39   :  { %440 = vmatprep.subr.bf16.mxu0 %v1532_v2  ;;  %572 = vmatprep.subr.bf16.mxu1 %v1532_v2 }
  0xa3   :  { %v105_v12 = vpop.permute.xlu0 %104 }
  0xa4   :  { %v108_v13 = vsel %vm72_vm0, %v97_v11, %v105_v12 }
  0xa5   :  { %v109_v14 = vpack.c.bf16 %v108_v13, %v108_v13 }
  0xa7   :  { %1268 = vmatmul.mubr.msk.bf16.vlgmr.msra.gmra.mxu0 %vm2208_vm1, %v109_v14 }
  0xa8   :  { %441 = vmatpush1.bf16.msra.mxu0 %v1536_v4  ;;  %464 = vmatprep.mubr.bf16.mxu0 %v1482_v1 }
  0xa9   :  { %442 = vmatprep.subr.bf16.mxu0 %v1541_v5 }
  0xac   :  { %443 = vmatpush1.bf16.msra.mxu0 %v1544_v6 }
  0xad   :  { %444 = vmatprep.subr.bf16.mxu0 %v1548_v7 }
  0xb0   :  { %445 = vmatpush1.bf16.msra.mxu0 %v1553_v8 }
  0xb1   :  { %446 = vmatprep.subr.bf16.mxu0 %v1556_v9 }
  0xb4   :  { %447 = vmatpush1.bf16.msra.mxu0 %v1561_v10 }
  0xb5   :  { %704 = vmatprep.subr.bf16.mxu0 %v1532_v2 }
 0x167   :  { %v188_v19 = vpop.f32.mrf.mxu0 }
 0x168   :  { %v197_v21 = vadd.f32 %v196_v17, %v188_v19  ;;  %v343_v17 = vunpack.c.h.bf16 %v1581_v15 }
 0x169   :  { %v190_v22 = vpop.f32.mrf.mxu0 }
 0x16a   :  { %1320 = vtanh.f32 %v197_v21  ;;  %v201_v23 = vadd.f32 %v200_v18, %v190_v22  ;;  %v347_v18 = vunpack.c.l.bf16 %v1583_v16 }
 0x16b   :  { %v192_v24 = vpop.f32.mrf.mxu0 }
 0x16c   :  { %1322 = vtanh.f32 %v201_v23 }
 0x16d   :  { %v193_v26 = vpop.f32.mrf.mxu0 }
 0x177   :  { %v1321_v29 = vpop.eup %1320 }
 0x178   :  { %v203_v31 = vmul.f32 %v1321_v29, %v1587_v28 }
 0x179   :  { %v1323_v32 = vpop.eup %1322 }
 0x17a   :  { %v204_v33 = vadd.f32 %v203_v31, %v1589_v30  ;;  %v206_v34 = vmul.f32 %v1323_v32, %v1587_v28 }
 0x17c   :  { %214 = vrot.lane.b32.xlu0 %v204_v33, %s1477_s24  ;;  %v207_v35 = vadd.f32 %v206_v34, %v1589_v30 }
 0x17e   :  { %229 = vrot.lane.b32.xlu1 %v207_v35, %s1477_s24 }
 0x180   :  { %224 = vrot.lane.b32.xlu0 %v100_v36, %s1483_s1  ;;  %v405_v36 = vsel %vm1273_vm10, 1, %v1482_v1  ;;  %vm1282_vm10 = vcmp.le.s32.totalorder %v1605_v39, 4 }
 0x182   :  { %209 = vrot.lane.b32.xlu1 %v99_v37, %s1483_s1 }
 0x1ee   :  { %v215_v40 = vpop.permute.xlu0 %214 }
 0x1ef   :  { %v217_v41 = vmul.f32 %v215_v40, %v204_v33 }
 0x1f0   :  { %v230_v42 = vpop.permute.xlu1 %229 }
 0x1f1   :  { %v232_v43 = vmul.f32 %v230_v42, %v207_v35  ;;  %219 = vrot.lane.b32.xlu1 %v217_v41, %s1483_s1 }
 0x1f2   :  { %v1616_v47 = vpop.permute.xlu0 %224 }
 0x1f3   :  { %234 = vrot.lane.b32.xlu0 %v232_v43, %s1483_s1  ;;  %v227_v51 = vmul.f32 %v1616_v47, %v207_v35 }
 0x1f4   :  { %v1614_v46 = vpop.permute.xlu1 %209 }
 0x1f5   :  { %255 = vperm.xlu1 %1306, %v253_v44   ;;  %v212_v48 = vmul.f32 %v1614_v46, %v204_v33 }
 0x1f7   :  { %272 = vperm.xlu0 %1307, %v270_v45  }
 0x1fb   :  { %259 = vrot.lane.b32.xlu0 %v97_v11, %s1485_s9 }
 0x263   :  { %v220_v49 = vpop.permute.xlu1 %219 }
 0x264   :  { %v1619_v50 = vadd.f32 %v220_v49, %v212_v48 }
 0x265   :  { %v235_v52 = vpop.permute.xlu0 %234 }
 0x266   :  { %1324 = vtanh.f32 %v1619_v50  ;;  %v1623_v53 = vadd.f32 %v235_v52, %v227_v51 }
 0x268   :  { %1326 = vtanh.f32 %v1623_v53 }
 0x270   :  { %v1630_v56 = vpop.permute.xlu1 %255 }
 0x271   :  { %vm257_vm7 = vcmp.eq.s32.totalorder %v1630_v56, 1 }
 0x272   :  { %v1632_v57 = vpop.permute.xlu0 %272  ;;  %v1683_v37 = vsel %vm257_vm7, %v1619_v50, %v1614_v46 }
 0x273   :  { %v1325_v54 = vpop.eup %1324  ;;  %vm274_vm8 = vcmp.eq.s32.totalorder %v1632_v57, 1 }
 0x274   :  { %240 = vrot.lane.b32.xlu1 %v1325_v54, %s1477_s24  ;;  %v1690_v41 = vsel %vm274_vm8, %v1623_v53, %v1616_v47 }
 0x275   :  { %v1327_v55 = vpop.eup %1326 }
 0x276   :  { %v260_v59 = vpop.permute.xlu0 %259 }
 0x278   :  { %246 = vrot.lane.b32.xlu1 %v1327_v55, %s1477_s24 }
 0x27c   :  { %275 = vrot.lane.b32.xlu1 %v1534_v3, %s1485_s9 }
 0x2e6   :  { %v241_v58 = vpop.permute.xlu1 %240 }
 0x2e7   :  { %v1634_v60 = vmul.f32 %v241_v58, %v204_v33 }
 0x2e9   :  { %v1640_v61 = vsel %vm257_vm7, %v1634_v60, %v260_v59 }
 0x2ea   :  { %288 = vrot.lane.b32.xlu0 %v1640_v61, %s1483_s1  ;;  %v247_v62 = vpop.permute.xlu1 %246 }
 0x2eb   :  { %v1644_v63 = vmul.f32 %v247_v62, %v207_v35  ;;  %v392_v35 = vsel %vm1272_vm9, 1, %v1482_v1  ;;  %vm1281_vm9 = vcmp.gt.s32.totalorder %v1602_v38, 4 }
 0x2ee   :  { %v276_v0 = vpop.permute.xlu1 %275 }
 0x2ef   :  { %v1650_v3 = vsel %vm274_vm8, %v1644_v63, %v276_v0 }
 0x2f0   :  { %292 = vrot.lane.b32.xlu1 %v1650_v3, %s1477_s24 }
 0x35c   :  { %v289_v11 = vpop.permute.xlu0 %288 }
 0x362   :  { %v293_v12 = vpop.permute.xlu1 %292 }
 0x363   :  { %v295_v13 = vsel %vm72_vm0, %v289_v11, %v293_v12  ;;  %v1740_v11 = vld [vmem:[#allocation11 + $0x10] sm:$0xff]  }
 0x364   :  { %v296_v14 = vpack.c.bf16 %v295_v13, %v295_v13  ;;  %v479_v13 = vunpack.c.h.bf16 %v1740_v11 }
 0x366   :  { %1271 = vmatmul.mubr.msk.bf16.vlgmr.msra.gmra.mxu1 %vm2208_vm1, %v296_v14 }
 0x367   :  { %573 = vmatpush1.bf16.msra.mxu1 %v1536_v4  ;;  %596 = vmatprep.mubr.bf16.mxu1 %v1482_v1 }
 0x368   :  { %574 = vmatprep.subr.bf16.mxu1 %v1541_v5 }
 0x36b   :  { %575 = vmatpush1.bf16.msra.mxu1 %v1544_v6 }
 0x36c   :  { %576 = vmatprep.subr.bf16.mxu1 %v1548_v7 }
 0x36f   :  { %577 = vmatpush1.bf16.msra.mxu1 %v1553_v8 }
 0x370   :  { %578 = vmatprep.subr.bf16.mxu1 %v1556_v9 }
 0x373   :  { %579 = vmatpush1.bf16.msra.mxu1 %v1561_v10 }
 0x374   :  { %836 = vmatprep.subr.bf16.mxu1 %v1532_v2 }
 0x426   :  { %v334_v19 = vpop.f32.mrf.mxu1 }
 0x427   :  { %v344_v20 = vadd.f32 %v343_v17, %v334_v19 }
 0x428   :  { %v336_v21 = vpop.f32.mrf.mxu1 }
 0x429   :  { %1328 = vtanh.f32 %v344_v20  ;;  %v348_v22 = vadd.f32 %v347_v18, %v336_v21 }
 0x42a   :  { %v338_v23 = vpop.f32.mrf.mxu1 }
 0x42b   :  { %1330 = vtanh.f32 %v348_v22 }
 0x42c   :  { %v339_v24 = vpop.f32.mrf.mxu1 }
 0x436   :  { %v1329_v25 = vpop.eup %1328 }
 0x437   :  { %v350_v26 = vmul.f32 %v1329_v25, %v1587_v28 }
 0x438   :  { %v1331_v27 = vpop.eup %1330 }
 0x439   :  { %v351_v29 = vadd.f32 %v350_v26, %v1589_v30  ;;  %v353_v31 = vmul.f32 %v1331_v27, %v1587_v28 }
 0x43b   :  { %357 = vrot.lane.b32.xlu0 %v351_v29, %s1477_s24  ;;  %v354_v15 = vadd.f32 %v353_v31, %v1589_v30  ;;  %v355_v40 = vmul.f32 %v351_v29, %v1683_v37 }
 0x43d   :  { %368 = vrot.lane.b32.xlu1 %v354_v15, %s1477_s24  ;;  %v366_v44 = vmul.f32 %v354_v15, %v1690_v41 }
 0x4ad   :  { %v358_v16 = vpop.permute.xlu0 %357 }
 0x4ae   :  { %v360_v32 = vmul.f32 %v358_v16, %v351_v29 }
 0x4af   :  { %v369_v33 = vpop.permute.xlu1 %368 }
 0x4b0   :  { %v371_v34 = vmul.f32 %v369_v33, %v354_v15  ;;  %362 = vrot.lane.b32.xlu0 %v360_v32, %s1483_s1  ;;  %v524_v32 = vsel %vm1275_vm13, 1, %v1482_v1  ;;  %v537_v33 = vsel %vm1276_vm14, 1, %v1482_v1 }
 0x4b2   :  { %373 = vrot.lane.b32.xlu1 %v371_v34, %s1483_s1 }
 0x4b4   :  { %394 = vperm.xlu0 %1307, %v392_v35  }
 0x4b6   :  { %407 = vperm.xlu1 %1306, %v405_v36  }
 0x522   :  { %v363_v42 = vpop.permute.xlu0 %362 }
 0x523   :  { %v1692_v43 = vadd.f32 %v363_v42, %v355_v40 }
 0x524   :  { %v374_v45 = vpop.permute.xlu1 %373 }
 0x525   :  { %1332 = vtanh.f32 %v1692_v43  ;;  %v1696_v48 = vadd.f32 %v374_v45, %v366_v44 }
 0x527   :  { %1334 = vtanh.f32 %v1696_v48 }
 0x52f   :  { %v1701_v47 = vpop.permute.xlu0 %394 }
 0x530   :  { %vm396_vm11 = vcmp.eq.s32.totalorder %v1701_v47, 1 }
 0x531   :  { %v1703_v50 = vpop.permute.xlu1 %407  ;;  %v1760_v34 = vsel %vm396_vm11, %v1692_v43, %v1683_v37 }
 0x532   :  { %v1333_v46 = vpop.eup %1332  ;;  %vm409_vm12 = vcmp.eq.s32.totalorder %v1703_v50, 1 }
 0x533   :  { %379 = vrot.lane.b32.xlu0 %v1333_v46, %s1477_s24  ;;  %v1767_v36 = vsel %vm409_vm12, %v1696_v48, %v1690_v41 }
 0x534   :  { %v1335_v49 = vpop.eup %1334 }
 0x535   :  { %385 = vrot.lane.b32.xlu1 %v1335_v49, %s1477_s24 }
 0x5a5   :  { %v380_v51 = vpop.permute.xlu0 %379 }
 0x5a6   :  { %v1705_v52 = vmul.f32 %v380_v51, %v351_v29 }
 0x5a7   :  { %v386_v53 = vpop.permute.xlu1 %385 }
 0x5a8   :  { %v1708_v54 = vmul.f32 %v386_v53, %v354_v15  ;;  %v1714_v55 = vsel %vm396_vm11, %v1705_v52, %v1640_v61 }
 0x5a9   :  { %420 = vrot.lane.b32.xlu0 %v1714_v55, %s1483_s1 }
 0x5aa   :  { %v1723_v58 = vsel %vm409_vm12, %v1708_v54, %v1650_v3  ;;  %v1738_v3 = vld [vmem:[#allocation8 + $0x8] sm:$0xff]  }
 0x5ab   :  { %424 = vrot.lane.b32.xlu1 %v1723_v58, %s1477_s24  ;;  %v475_v12 = vunpack.c.l.bf16 %v1738_v3 }
 0x61b   :  { %v421_v59 = vpop.permute.xlu0 %420 }
 0x61d   :  { %v425_v62 = vpop.permute.xlu1 %424 }
 0x61e   :  { %v427_v0 = vsel %vm72_vm0, %v421_v59, %v425_v62 }
 0x61f   :  { %v428_v61 = vpack.c.bf16 %v427_v0, %v427_v0 }
 0x621   :  { %1274 = vmatmul.mubr.msk.bf16.vlgmr.msra.gmra.mxu0 %vm2208_vm1, %v428_v61 }
 0x622   :  { %705 = vmatpush1.bf16.msra.mxu0 %v1536_v4  ;;  %728 = vmatprep.mubr.bf16.mxu0 %v1482_v1 }
 0x623   :  { %706 = vmatprep.subr.bf16.mxu0 %v1541_v5 }
 0x626   :  { %707 = vmatpush1.bf16.msra.mxu0 %v1544_v6 }
 0x627   :  { %708 = vmatprep.subr.bf16.mxu0 %v1548_v7 }
 0x62a   :  { %709 = vmatpush1.bf16.msra.mxu0 %v1553_v8 }
 0x62b   :  { %710 = vmatprep.subr.bf16.mxu0 %v1556_v9 }
 0x62e   :  { %711 = vmatpush1.bf16.msra.mxu0 %v1561_v10 }
 0x62f   :  { %968 = vmatprep.subr.bf16.mxu0 %v1532_v2 }
 0x6e1   :  { %v466_v14 = vpop.f32.mrf.mxu0 }
 0x6e2   :  { %v476_v17 = vadd.f32 %v475_v12, %v466_v14  ;;  %v611_v14 = vunpack.c.l.bf16 %v1740_v11 }
 0x6e3   :  { %v468_v18 = vpop.f32.mrf.mxu0 }
 0x6e4   :  { %1336 = vtanh.f32 %v476_v17  ;;  %v480_v19 = vadd.f32 %v479_v13, %v468_v18 }
 0x6e5   :  { %v470_v20 = vpop.f32.mrf.mxu0 }
 0x6e6   :  { %1338 = vtanh.f32 %v480_v19 }
 0x6e7   :  { %v471_v21 = vpop.f32.mrf.mxu0 }
 0x6f1   :  { %v1337_v22 = vpop.eup %1336 }
 0x6f2   :  { %v482_v23 = vmul.f32 %v1337_v22, %v1587_v28 }
 0x6f3   :  { %v1339_v24 = vpop.eup %1338 }
 0x6f4   :  { %v483_v25 = vadd.f32 %v482_v23, %v1589_v30  ;;  %v485_v26 = vmul.f32 %v1339_v24, %v1587_v28 }
 0x6f6   :  { %489 = vrot.lane.b32.xlu0 %v483_v25, %s1477_s24  ;;  %v486_v27 = vadd.f32 %v485_v26, %v1589_v30  ;;  %v487_v35 = vmul.f32 %v483_v25, %v1760_v34 }
 0x6f8   :  { %500 = vrot.lane.b32.xlu1 %v486_v27, %s1477_s24  ;;  %v498_v44 = vmul.f32 %v486_v27, %v1767_v36 }
 0x768   :  { %v490_v29 = vpop.permute.xlu0 %489 }
 0x769   :  { %v492_v31 = vmul.f32 %v490_v29, %v483_v25 }
 0x76a   :  { %v501_v15 = vpop.permute.xlu1 %500 }
 0x76b   :  { %v503_v16 = vmul.f32 %v501_v15, %v486_v27  ;;  %494 = vrot.lane.b32.xlu0 %v492_v31, %s1483_s1  ;;  %v656_v15 = vsel %vm1278_vm3, 1, %v1482_v1  ;;  %vm1284_vm3 = vcmp.gt.s32.totalorder %v1602_v38, 5 }
 0x76d   :  { %505 = vrot.lane.b32.xlu1 %v503_v16, %s1483_s1  ;;  %v669_v16 = vsel %vm1279_vm4, 1, %v1482_v1  ;;  %vm1285_vm4 = vcmp.le.s32.totalorder %v1605_v39, 5 }
 0x76f   :  { %526 = vperm.xlu0 %1307, %v524_v32  }
 0x771   :  { %539 = vperm.xlu1 %1306, %v537_v33  }
 0x7dd   :  { %v495_v40 = vpop.permute.xlu0 %494 }
 0x7de   :  { %v1769_v42 = vadd.f32 %v495_v40, %v487_v35 }
 0x7df   :  { %v506_v45 = vpop.permute.xlu1 %505 }
 0x7e0   :  { %1340 = vtanh.f32 %v1769_v42  ;;  %v1773_v46 = vadd.f32 %v506_v45, %v498_v44 }
 0x7e2   :  { %1342 = vtanh.f32 %v1773_v46 }
 0x7ea   :  { %v1778_v41 = vpop.permute.xlu0 %526 }
 0x7eb   :  { %vm528_vm15 = vcmp.eq.s32.totalorder %v1778_v41, 1 }
 0x7ec   :  { %v1780_v48 = vpop.permute.xlu1 %539  ;;  %v1833_v32 = vsel %vm528_vm15, %v1769_v42, %v1760_v34 }
 0x7ed   :  { %v1341_v37 = vpop.eup %1340  ;;  %vm541_vm2 = vcmp.eq.s32.totalorder %v1780_v48, 1 }
 0x7ee   :  { %511 = vrot.lane.b32.xlu0 %v1341_v37, %s1477_s24  ;;  %v1840_v35 = vsel %vm541_vm2, %v1773_v46, %v1767_v36 }
 0x7ef   :  { %v1343_v43 = vpop.eup %1342 }
 0x7f0   :  { %517 = vrot.lane.b32.xlu1 %v1343_v43, %s1477_s24 }
 0x860   :  { %v512_v49 = vpop.permute.xlu0 %511 }
 0x861   :  { %v1782_v51 = vmul.f32 %v512_v49, %v483_v25 }
 0x862   :  { %v518_v53 = vpop.permute.xlu1 %517 }
 0x863   :  { %v1785_v59 = vmul.f32 %v518_v53, %v486_v27  ;;  %v1791_v62 = vsel %vm528_vm15, %v1782_v51, %v1714_v55 }
 0x864   :  { %552 = vrot.lane.b32.xlu0 %v1791_v62, %s1483_s1 }
 0x865   :  { %v1800_v0 = vsel %vm541_vm2, %v1785_v59, %v1723_v58  ;;  %v607_v58 = vunpack.c.h.bf16 %v1738_v3 }
 0x866   :  { %556 = vrot.lane.b32.xlu1 %v1800_v0, %s1477_s24 }
 0x8d6   :  { %v553_v61 = vpop.permute.xlu0 %552 }
 0x8d8   :  { %v557_v12 = vpop.permute.xlu1 %556 }
 0x8d9   :  { %v559_v13 = vsel %vm72_vm0, %v553_v61, %v557_v12 }
 0x8da   :  { %v560_v55 = vpack.c.bf16 %v559_v13, %v559_v13 }
 0x8dc   :  { %1277 = vmatmul.mubr.msk.bf16.vlgmr.msra.gmra.mxu1 %vm2208_vm1, %v560_v55 }
 0x8dd   :  { %837 = vmatpush1.bf16.msra.mxu1 %v1536_v4  ;;  %860 = vmatprep.mubr.bf16.mxu1 %v1482_v1 }
 0x8de   :  { %838 = vmatprep.subr.bf16.mxu1 %v1541_v5 }
 0x8e1   :  { %839 = vmatpush1.bf16.msra.mxu1 %v1544_v6 }
 0x8e2   :  { %840 = vmatprep.subr.bf16.mxu1 %v1548_v7 }
 0x8e5   :  { %841 = vmatpush1.bf16.msra.mxu1 %v1553_v8 }
 0x8e6   :  { %842 = vmatprep.subr.bf16.mxu1 %v1556_v9 }
 0x8e9   :  { %843 = vmatpush1.bf16.msra.mxu1 %v1561_v10 }
 0x8ea   :  { %1100 = vmatprep.subr.bf16.mxu1 %v1532_v2 }
 0x99c   :  { %v598_v17 = vpop.f32.mrf.mxu1 }
 0x99d   :  { %v608_v18 = vadd.f32 %v607_v58, %v598_v17 }
 0x99e   :  { %v600_v19 = vpop.f32.mrf.mxu1 }
 0x99f   :  { %1344 = vtanh.f32 %v608_v18  ;;  %v612_v20 = vadd.f32 %v611_v14, %v600_v19  ;;  %v1889_v18 = vld [vmem:[#allocation11 + $0x8] sm:$0xff]  }
 0x9a0   :  { %v602_v21 = vpop.f32.mrf.mxu1 }
 0x9a1   :  { %1346 = vtanh.f32 %v612_v20  ;;  %v743_v20 = vunpack.c.h.bf16 %v1889_v18 }
 0x9a2   :  { %v603_v22 = vpop.f32.mrf.mxu1 }
 0x9ac   :  { %v1345_v23 = vpop.eup %1344 }
 0x9ad   :  { %v614_v24 = vmul.f32 %v1345_v23, %v1587_v28 }
 0x9ae   :  { %v1347_v25 = vpop.eup %1346 }
 0x9af   :  { %v615_v26 = vadd.f32 %v614_v24, %v1589_v30  ;;  %v617_v2 = vmul.f32 %v1347_v25, %v1587_v28 }
 0x9b1   :  { %621 = vrot.lane.b32.xlu0 %v615_v26, %s1477_s24  ;;  %v618_v3 = vadd.f32 %v617_v2, %v1589_v30  ;;  %v619_v33 = vmul.f32 %v615_v26, %v1833_v32 }
 0x9b3   :  { %632 = vrot.lane.b32.xlu1 %v618_v3, %s1477_s24  ;;  %v630_v45 = vmul.f32 %v618_v3, %v1840_v35 }
 0xa23   :  { %v622_v11 = vpop.permute.xlu0 %621 }
 0xa24   :  { %v624_v27 = vmul.f32 %v622_v11, %v615_v26 }
 0xa25   :  { %v633_v29 = vpop.permute.xlu1 %632 }
 0xa26   :  { %v635_v31 = vmul.f32 %v633_v29, %v618_v3  ;;  %626 = vrot.lane.b32.xlu0 %v624_v27, %s1483_s1 }
 0xa28   :  { %637 = vrot.lane.b32.xlu1 %v635_v31, %s1483_s1 }
 0xa2a   :  { %658 = vperm.xlu0 %1307, %v656_v15  }
 0xa2c   :  { %671 = vperm.xlu1 %1306, %v669_v16  }
 0xa98   :  { %v627_v40 = vpop.permute.xlu0 %626 }
 0xa99   :  { %v1842_v44 = vadd.f32 %v627_v40, %v619_v33 }
 0xa9a   :  { %v638_v37 = vpop.permute.xlu1 %637 }
 0xa9b   :  { %1348 = vtanh.f32 %v1842_v44  ;;  %v1846_v43 = vadd.f32 %v638_v37, %v630_v45  ;;  %v788_v45 = vsel %vm1281_vm9, 1, %v1482_v1  ;;  %v801_v37 = vsel %vm1282_vm10, 1, %v1482_v1 }
 0xa9d   :  { %1350 = vtanh.f32 %v1846_v43 }
 0xaa5   :  { %v1851_v36 = vpop.permute.xlu0 %658 }
 0xaa6   :  { %vm660_vm5 = vcmp.eq.s32.totalorder %v1851_v36, 1 }
 0xaa7   :  { %v1853_v46 = vpop.permute.xlu1 %671 }
 0xaa8   :  { %v1349_v34 = vpop.eup %1348  ;;  %vm673_vm6 = vcmp.eq.s32.totalorder %v1853_v46, 1 }
 0xaa9   :  { %643 = vrot.lane.b32.xlu0 %v1349_v34, %s1477_s24  ;;  %v1909_v34 = vsel %vm660_vm5, %v1842_v44, %v1833_v32 }
 0xaaa   :  { %v1351_v42 = vpop.eup %1350 }
 0xaab   :  { %649 = vrot.lane.b32.xlu1 %v1351_v42, %s1477_s24 }
 0xb1b   :  { %v644_v49 = vpop.permute.xlu0 %643 }
 0xb1c   :  { %v1855_v53 = vmul.f32 %v644_v49, %v615_v26  ;;  %v1916_v49 = vsel %vm673_vm6, %v1846_v43, %v1840_v35 }
 0xb1d   :  { %v650_v61 = vpop.permute.xlu1 %649 }
 0xb1e   :  { %v1858_v12 = vmul.f32 %v650_v61, %v618_v3  ;;  %v1864_v13 = vsel %vm660_vm5, %v1855_v53, %v1791_v62 }
 0xb1f   :  { %684 = vrot.lane.b32.xlu0 %v1864_v13, %s1483_s1 }
 0xb20   :  { %v1873_v55 = vsel %vm673_vm6, %v1858_v12, %v1800_v0  ;;  %v1887_v0 = vld [vmem:[#allocation8 + $0x10] sm:$0xff]  }
 0xb21   :  { %688 = vrot.lane.b32.xlu1 %v1873_v55, %s1477_s24  ;;  %v739_v19 = vunpack.c.l.bf16 %v1887_v0 }
 0xb91   :  { %v685_v58 = vpop.permute.xlu0 %684 }
 0xb93   :  { %v689_v14 = vpop.permute.xlu1 %688 }
 0xb94   :  { %v691_v17 = vsel %vm72_vm0, %v685_v58, %v689_v14 }
 0xb95   :  { %v692_v62 = vpack.c.bf16 %v691_v17, %v691_v17 }
 0xb97   :  { %1280 = vmatmul.mubr.msk.bf16.vlgmr.msra.gmra.mxu0 %vm2208_vm1, %v692_v62 }
 0xb98   :  { %969 = vmatpush1.bf16.msra.mxu0 %v1536_v4  ;;  %992 = vmatprep.mubr.bf16.mxu0 %v1482_v1 }
 0xb99   :  { %970 = vmatprep.subr.bf16.mxu0 %v1541_v5 }
 0xb9c   :  { %971 = vmatpush1.bf16.msra.mxu0 %v1544_v6 }
 0xb9d   :  { %972 = vmatprep.subr.bf16.mxu0 %v1548_v7 }
 0xba0   :  { %973 = vmatpush1.bf16.msra.mxu0 %v1553_v8 }
 0xba1   :  { %974 = vmatprep.subr.bf16.mxu0 %v1556_v9 }
 0xba4   :  { %975 = vmatpush1.bf16.msra.mxu0 %v1561_v10 }
 0xc57   :  { %v730_v21 = vpop.f32.mrf.mxu0 }
 0xc58   :  { %v740_v22 = vadd.f32 %v739_v19, %v730_v21 }
 0xc59   :  { %v732_v23 = vpop.f32.mrf.mxu0 }
 0xc5a   :  { %1352 = vtanh.f32 %v740_v22  ;;  %v744_v24 = vadd.f32 %v743_v20, %v732_v23 }
 0xc5b   :  { %v734_v25 = vpop.f32.mrf.mxu0 }
 0xc5c   :  { %1354 = vtanh.f32 %v744_v24 }
 0xc5d   :  { %v735_v26 = vpop.f32.mrf.mxu0 }
 0xc67   :  { %v1353_v2 = vpop.eup %1352 }
 0xc68   :  { %v746_v3 = vmul.f32 %v1353_v2, %v1587_v28 }
 0xc69   :  { %v1355_v11 = vpop.eup %1354 }
 0xc6a   :  { %v747_v27 = vadd.f32 %v746_v3, %v1589_v30  ;;  %v749_v29 = vmul.f32 %v1355_v11, %v1587_v28  ;;  %v875_v3 = vunpack.c.l.bf16 %v1889_v18 }
 0xc6c   :  { %753 = vrot.lane.b32.xlu0 %v747_v27, %s1477_s24  ;;  %v750_v31 = vadd.f32 %v749_v29, %v1589_v30  ;;  %v751_v42 = vmul.f32 %v747_v27, %v1909_v34 }
 0xc6e   :  { %764 = vrot.lane.b32.xlu1 %v750_v31, %s1477_s24  ;;  %v762_v14 = vmul.f32 %v750_v31, %v1916_v49 }
 0xcde   :  { %v754_v15 = vpop.permute.xlu0 %753 }
 0xcdf   :  { %v756_v16 = vmul.f32 %v754_v15, %v747_v27 }
 0xce0   :  { %v765_v33 = vpop.permute.xlu1 %764 }
 0xce1   :  { %v767_v40 = vmul.f32 %v765_v33, %v750_v31  ;;  %758 = vrot.lane.b32.xlu0 %v756_v16, %s1483_s1 }
 0xce3   :  { %769 = vrot.lane.b32.xlu1 %v767_v40, %s1483_s1  ;;  %v920_v40 = vsel %vm1284_vm3, 1, %v1482_v1  ;;  %vm1287_vm3 = vcmp.gt.s32.totalorder %v1602_v38, 6 }
 0xce5   :  { %790 = vperm.xlu0 %1307, %v788_v45   ;;  %v933_v45 = vsel %vm1285_vm4, 1, %v1482_v1  ;;  %vm1288_vm4 = vcmp.le.s32.totalorder %v1605_v39, 6 }
 0xce7   :  { %803 = vperm.xlu1 %1306, %v801_v37  }
 0xd53   :  { %v759_v61 = vpop.permute.xlu0 %758 }
 0xd54   :  { %v1918_v58 = vadd.f32 %v759_v61, %v751_v42 }
 0xd55   :  { %v770_v17 = vpop.permute.xlu1 %769 }
 0xd56   :  { %1356 = vtanh.f32 %v1918_v58  ;;  %v1922_v62 = vadd.f32 %v770_v17, %v762_v14 }
 0xd58   :  { %1358 = vtanh.f32 %v1922_v62 }
 0xd60   :  { %v1927_v35 = vpop.permute.xlu0 %790 }
 0xd61   :  { %vm792_vm13 = vcmp.eq.s32.totalorder %v1927_v35, 1 }
 0xd62   :  { %v1929_v43 = vpop.permute.xlu1 %803  ;;  %v1981_v37 = vsel %vm792_vm13, %v1918_v58, %v1909_v34 }
 0xd63   :  { %v1357_v32 = vpop.eup %1356  ;;  %vm805_vm14 = vcmp.eq.s32.totalorder %v1929_v43, 1 }
 0xd64   :  { %775 = vrot.lane.b32.xlu0 %v1357_v32, %s1477_s24  ;;  %v1988_v61 = vsel %vm805_vm14, %v1922_v62, %v1916_v49 }
 0xd65   :  { %v1359_v44 = vpop.eup %1358 }
 0xd66   :  { %781 = vrot.lane.b32.xlu1 %v1359_v44, %s1477_s24 }
 0xdd6   :  { %v776_v19 = vpop.permute.xlu0 %775 }
 0xdd7   :  { %v1931_v20 = vmul.f32 %v776_v19, %v747_v27 }
 0xdd8   :  { %v782_v21 = vpop.permute.xlu1 %781 }
 0xdd9   :  { %v1934_v22 = vmul.f32 %v782_v21, %v750_v31  ;;  %v1940_v23 = vsel %vm792_vm13, %v1931_v20, %v1864_v13 }
 0xdda   :  { %816 = vrot.lane.b32.xlu0 %v1940_v23, %s1483_s1 }
 0xddb   :  { %v1949_v24 = vsel %vm805_vm14, %v1934_v22, %v1873_v55  ;;  %v871_v55 = vunpack.c.h.bf16 %v1887_v0 }
 0xddc   :  { %820 = vrot.lane.b32.xlu1 %v1949_v24, %s1477_s24 }
 0xe4c   :  { %v817_v25 = vpop.permute.xlu0 %816 }
 0xe4e   :  { %v821_v26 = vpop.permute.xlu1 %820 }
 0xe4f   :  { %v823_v2 = vsel %vm72_vm0, %v817_v25, %v821_v26 }
 0xe50   :  { %v824_v13 = vpack.c.bf16 %v823_v2, %v823_v2 }
 0xe52   :  { %1283 = vmatmul.mubr.msk.bf16.vlgmr.msra.gmra.mxu1 %vm2208_vm1, %v824_v13 }
 0xe53   :  { %1101 = vmatpush1.bf16.msra.mxu1 %v1536_v4  ;;  %1124 = vmatprep.mubr.bf16.mxu1 %v1482_v1 }
 0xe54   :  { %1102 = vmatprep.subr.bf16.mxu1 %v1541_v5 }
 0xe57   :  { %1103 = vmatpush1.bf16.msra.mxu1 %v1544_v6 }
 0xe58   :  { %1104 = vmatprep.subr.bf16.mxu1 %v1548_v7 }
 0xe5b   :  { %1105 = vmatpush1.bf16.msra.mxu1 %v1553_v8 }
 0xe5c   :  { %1106 = vmatprep.subr.bf16.mxu1 %v1556_v9 }
 0xe5f   :  { %1107 = vmatpush1.bf16.msra.mxu1 %v1561_v10 }
 0xf12   :  { %v862_v11 = vpop.f32.mrf.mxu1 }
 0xf13   :  { %v872_v4 = vadd.f32 %v871_v55, %v862_v11 }
 0xf14   :  { %v864_v27 = vpop.f32.mrf.mxu1 }
 0xf15   :  { %1360 = vtanh.f32 %v872_v4  ;;  %v876_v29 = vadd.f32 %v875_v3, %v864_v27  ;;  %v2021_v27 = vld [vmem:[#allocation8 + $0x18] sm:$0xff]  }
 0xf16   :  { %v866_v5 = vpop.f32.mrf.mxu1 }
 0xf17   :  { %1362 = vtanh.f32 %v876_v29  ;;  %v2023_v29 = vld [vmem:[#allocation11] sm:$0xff]   ;;  %v1003_v5 = vunpack.c.l.bf16 %v2021_v27 }
 0xf18   :  { %v867_v6 = vpop.f32.mrf.mxu1 }
 0xf19   :  { %v1007_v6 = vunpack.c.h.bf16 %v2023_v29 }
 0xf22   :  { %v1361_v31 = vpop.eup %1360 }
 0xf23   :  { %v878_v7 = vmul.f32 %v1361_v31, %v1587_v28 }
 0xf24   :  { %v1363_v8 = vpop.eup %1362 }
 0xf25   :  { %v879_v9 = vadd.f32 %v878_v7, %v1589_v30  ;;  %v881_v10 = vmul.f32 %v1363_v8, %v1587_v28 }
 0xf27   :  { %885 = vrot.lane.b32.xlu0 %v879_v9, %s1477_s24  ;;  %v882_v0 = vadd.f32 %v881_v10, %v1589_v30  ;;  %v883_v42 = vmul.f32 %v879_v9, %v1981_v37 }
 0xf29   :  { %896 = vrot.lane.b32.xlu1 %v882_v0, %s1477_s24  ;;  %v894_v32 = vmul.f32 %v882_v0, %v1988_v61 }
 0xf99   :  { %v886_v18 = vpop.permute.xlu0 %885 }
 0xf9a   :  { %v888_v15 = vmul.f32 %v886_v18, %v879_v9 }
 0xf9b   :  { %v897_v16 = vpop.permute.xlu1 %896 }
 0xf9c   :  { %v899_v33 = vmul.f32 %v897_v16, %v882_v0  ;;  %890 = vrot.lane.b32.xlu0 %v888_v15, %s1483_s1 }
 0xf9e   :  { %901 = vrot.lane.b32.xlu1 %v899_v33, %s1483_s1 }
 0xfa0   :  { %922 = vperm.xlu0 %1307, %v920_v40  }
 0xfa2   :  { %935 = vperm.xlu1 %1306, %v933_v45  }
0x100e   :  { %v891_v14 = vpop.permute.xlu0 %890 }
0x100f   :  { %v893_v17 = vadd.f32 %v891_v14, %v883_v42 }
0x1010   :  { %v902_v44 = vpop.permute.xlu1 %901 }
0x1011   :  { %1364 = vtanh.f32 %v893_v17  ;;  %v904_v19 = vadd.f32 %v902_v44, %v894_v32  ;;  %v1052_v44 = vsel %vm1287_vm3, 1, %v1482_v1 }
0x1013   :  { %1366 = vtanh.f32 %v904_v19 }
0x101b   :  { %v1993_v58 = vpop.permute.xlu0 %922 }
0x101c   :  { %vm924_vm9 = vcmp.eq.s32.totalorder %v1993_v58, 1 }
0x101d   :  { %v1995_v25 = vpop.permute.xlu1 %935 }
0x101e   :  { %v1365_v21 = vpop.eup %1364  ;;  %vm937_vm10 = vcmp.eq.s32.totalorder %v1995_v25, 1 }
0x101f   :  { %907 = vrot.lane.b32.xlu0 %v1365_v21, %s1477_s24  ;;  %v1065_v21 = vsel %vm1288_vm4, 1, %v1482_v1 }
0x1020   :  { %v1367_v34 = vpop.eup %1366 }
0x1021   :  { %913 = vrot.lane.b32.xlu1 %v1367_v34, %s1477_s24  ;;  %v2042_v34 = vsel %vm924_vm9, %v893_v17, %v1981_v37 }
0x1091   :  { %v908_v49 = vpop.permute.xlu0 %907 }
0x1092   :  { %v1997_v62 = vmul.f32 %v908_v49, %v879_v9  ;;  %v2048_v49 = vsel %vm937_vm10, %v904_v19, %v1988_v61 }
0x1093   :  { %v914_v26 = vpop.permute.xlu1 %913 }
0x1094   :  { %v2000_v2 = vmul.f32 %v914_v26, %v882_v0  ;;  %v2006_v13 = vsel %vm924_vm9, %v1997_v62, %v1940_v23 }
0x1095   :  { %948 = vrot.lane.b32.xlu0 %v2006_v13, %s1483_s1 }
0x1096   :  { %v2015_v55 = vsel %vm937_vm10, %v2000_v2, %v1949_v24 }
0x1097   :  { %952 = vrot.lane.b32.xlu1 %v2015_v55, %s1477_s24 }
0x1107   :  { %v949_v3 = vpop.permute.xlu0 %948 }
0x1109   :  { %v953_v11 = vpop.permute.xlu1 %952 }
0x110a   :  { %v955_v4 = vsel %vm72_vm0, %v949_v3, %v953_v11 }
0x110b   :  { %v956_v23 = vpack.c.bf16 %v955_v4, %v955_v4 }
0x110d   :  { %1286 = vmatmul.mubr.msk.bf16.vlgmr.msra.gmra.mxu0 %vm2208_vm1, %v956_v23 }
0x11cd   :  { %v994_v24 = vpop.f32.mrf.mxu0 }
0x11ce   :  { %v1004_v31 = vadd.f32 %v1003_v5, %v994_v24 }
0x11cf   :  { %v996_v7 = vpop.f32.mrf.mxu0 }
0x11d0   :  { %1368 = vtanh.f32 %v1004_v31  ;;  %v1008_v8 = vadd.f32 %v1007_v6, %v996_v7 }
0x11d1   :  { %v998_v9 = vpop.f32.mrf.mxu0 }
0x11d2   :  { %1370 = vtanh.f32 %v1008_v8 }
0x11d3   :  { %v999_v10 = vpop.f32.mrf.mxu0 }
0x11dd   :  { %v1369_v0 = vpop.eup %1368 }
0x11de   :  { %v1010_v18 = vmul.f32 %v1369_v0, %v1587_v28 }
0x11df   :  { %v1371_v15 = vpop.eup %1370 }
0x11e0   :  { %v1011_v16 = vadd.f32 %v1010_v18, %v1589_v30  ;;  %v1013_v33 = vmul.f32 %v1371_v15, %v1587_v28  ;;  %v1138_v15 = vunpack.c.l.bf16 %v2023_v29  ;;  %v1486_v29 = vmov -inf  }
0x11e1   :  { %78 = vst.msk [vmem:[#allocation7] sm:$0xff] %vm72_vm0, %v1486_v29  ;;  %77 = vst.msk [vmem:[#allocation6] sm:$0xff] %vm72_vm0, %v1486_v29 }
0x11e2   :  { %1017 = vrot.lane.b32.xlu0 %v1011_v16, %s1477_s24  ;;  %v1014_v40 = vadd.f32 %v1013_v33, %v1589_v30  ;;  %v1015_v38 = vmul.f32 %v1011_v16, %v2042_v34 }
0x11e4   :  { %1028 = vrot.lane.b32.xlu1 %v1014_v40, %s1477_s24  ;;  %v1026_v11 = vmul.f32 %v1014_v40, %v2048_v49 }
0x1254   :  { %v1018_v45 = vpop.permute.xlu0 %1017 }
0x1255   :  { %v1020_v42 = vmul.f32 %v1018_v45, %v1011_v16 }
0x1256   :  { %v1029_v14 = vpop.permute.xlu1 %1028 }
0x1257   :  { %v1031_v32 = vmul.f32 %v1029_v14, %v1014_v40  ;;  %1022 = vrot.lane.b32.xlu0 %v1020_v42, %s1483_s1 }
0x1259   :  { %1033 = vrot.lane.b32.xlu1 %v1031_v32, %s1483_s1 }
0x125b   :  { %1054 = vperm.xlu0 %1307, %v1052_v44  }
0x125d   :  { %1067 = vperm.xlu1 %1306, %v1065_v21  }
0x12c9   :  { %v1023_v26 = vpop.permute.xlu0 %1022 }
0x12ca   :  { %v1025_v3 = vadd.f32 %v1023_v26, %v1015_v38 }
0x12cb   :  { %v1034_v4 = vpop.permute.xlu1 %1033 }
0x12cc   :  { %1372 = vtanh.f32 %v1025_v3  ;;  %v1036_v23 = vadd.f32 %v1034_v4, %v1026_v11 }
0x12ce   :  { %1374 = vtanh.f32 %v1036_v23 }
0x12d6   :  { %v2053_v17 = vpop.permute.xlu0 %1054 }
0x12d7   :  { %vm1056_vm3 = vcmp.eq.s32.totalorder %v2053_v17, 1 }
0x12d8   :  { %v2055_v6 = vpop.permute.xlu1 %1067 }
0x12d9   :  { %v1373_v5 = vpop.eup %1372  ;;  %vm1069_vm4 = vcmp.eq.s32.totalorder %v2055_v6, 1 }
0x12da   :  { %1039 = vrot.lane.b32.xlu0 %v1373_v5, %s1477_s24 }
0x12db   :  { %v1375_v37 = vpop.eup %1374 }
0x12dc   :  { %1045 = vrot.lane.b32.xlu1 %v1375_v37, %s1477_s24 }
0x134c   :  { %v1040_v61 = vpop.permute.xlu0 %1039 }
0x134d   :  { %v2057_v19 = vmul.f32 %v1040_v61, %v1011_v16 }
0x134e   :  { %v1046_v24 = vpop.permute.xlu1 %1045 }
0x134f   :  { %v1048_v31 = vmul.f32 %v1046_v24, %v1014_v40  ;;  %v2064_v7 = vsel %vm1056_vm3, %v2057_v19, %v2006_v13  ;;  %v1135_v13 = vunpack.c.h.bf16 %v2021_v27 }
0x1350   :  { %1080 = vrot.lane.b32.xlu0 %v2064_v7, %s1483_s1 }
0x1351   :  { %v2072_v8 = vsel %vm1069_vm4, %v1048_v31, %v2015_v55 }
0x1352   :  { %1084 = vrot.lane.b32.xlu1 %v2072_v8, %s1477_s24 }
0x13c2   :  { %v1081_v9 = vpop.permute.xlu0 %1080 }
0x13c4   :  { %v1085_v10 = vpop.permute.xlu1 %1084 }
0x13c5   :  { %v1087_v0 = vsel %vm72_vm0, %v1081_v9, %v1085_v10  ;;  %v102_v9 = vld [vmem:[#allocation7] sm:$0xff] }
0x13c6   :  { %v1088_v18 = vpack.c.bf16 %v1087_v0, %v1087_v0 }
0x13c8   :  { %1289 = vmatmul.mubr.msk.bf16.vlgmr.msra.gmra.mxu1 %vm2208_vm1, %v1088_v18  ;;  %vm1291_vm1 = vcmp.le.s32.totalorder %v1605_v39, 7 }
0x1488   :  { %v1126_v16 = vpop.f32.mrf.mxu1 }
0x1489   :  { %v1136_v33 = vadd.f32 %v1135_v13, %v1126_v16 }
0x148a   :  { %v1128_v40 = vpop.f32.mrf.mxu1 }
0x148b   :  { %1376 = vtanh.f32 %v1136_v33  ;;  %v1139_v55 = vadd.f32 %v1138_v15, %v1128_v40 }
0x148c   :  { %v1130_v45 = vpop.f32.mrf.mxu1 }
0x148d   :  { %1378 = vtanh.f32 %v1139_v55 }
0x148e   :  { %v1131_v42 = vpop.f32.mrf.mxu1 }
0x1498   :  { %v1377_v14 = vpop.eup %1376 }
0x1499   :  { %v1141_v32 = vmul.f32 %v1377_v14, %v1587_v28 }
0x149a   :  { %v1379_v44 = vpop.eup %1378 }
0x149b   :  { %v2082_v21 = vadd.f32 %v1141_v32, %v1589_v30  ;;  %v1144_v38 = vmul.f32 %v1379_v44, %v1587_v28  ;;  %v1196_v28 = vsel %vm1291_vm1, 1, %v1482_v1 }
0x149d   :  { %1148 = vrot.lane.b32.xlu1 %v2082_v21, %s1477_s24  ;;  %v1145_v27 = vadd.f32 %v1144_v38, %v1589_v30  ;;  %v2105_v30 = vsel %vm1056_vm3, %v1025_v3, %v2042_v34 }
0x149e   :  { %v1146_v37 = vmul.f32 %v2082_v21, %v2105_v30 }
0x149f   :  { %1159 = vrot.lane.b32.xlu0 %v1145_v27, %s1477_s24 }
0x150f   :  { %v1149_v26 = vpop.permute.xlu1 %1148 }
0x1510   :  { %v1151_v11 = vmul.f32 %v1149_v26, %v2082_v21 }
0x1511   :  { %v1160_v4 = vpop.permute.xlu0 %1159 }
0x1512   :  { %v1162_v5 = vmul.f32 %v1160_v4, %v1145_v27  ;;  %1153 = vrot.lane.b32.xlu1 %v1151_v11, %s1483_s1 }
0x1514   :  { %1164 = vrot.lane.b32.xlu0 %v1162_v5, %s1483_s1 }
0x1516   :  { %281 = vrot.lane.b32.xlu1 %v1644_v63, %s1483_s1  ;;  %v2112_v63 = vsel %vm1069_vm4, %v1036_v23, %v2048_v49  ;;  %v1384_v49 = vld [vmem:[%s2203_s0] sm:$0xff]  ;;  %s1487_s0 = smov [#allocation14]  }
0x1517   :  { %vm1290_vm1 = vcmp.gt.s32.totalorder %v1384_v49, 7  ;;  %s1246_s12 = sshll.u32 %s1487_s0, 4  ;;  %s1247_s12 = int_to_ptr.vmem [resolvable:$true] %s1246_s12 }
0x1518   :  { %v1183_v23 = vsel %vm1290_vm1, 1, %v1482_v1  ;;  %s1448_s13 = scalar_lea.vmem %s1247_s12, 128  ;;  %p1453_p2 = scmp.lt.s32.totalorder %s1247_s12, %s1247_s12 }
0x1519   :  { %p1449_p1 = scmp.ne.s32.totalorder %s1247_s12, %s1448_s13  ;;  %p1454_p3 = scmp.lt.s32.totalorder %s1448_s13, %s1448_s13 }
0x151a   :  { %545 = vrot.lane.b32.xlu1 %v1785_v59, %s1483_s1 }
0x151b   :  { %p1455_p4 = por %p1454_p3, %p1453_p2 }
0x151d   :  { %p1456_p5 = pnand %p1455_p4, %p1449_p1 }
0x151e   :  { %809 = vrot.lane.b32.xlu1 %v1934_v22, %s1483_s1  ;;  %v1157_v22 = vmul.f32 %v1145_v27, %v2112_v63 }
0x1522   :  { %1198 = vperm.xlu1 %1306, %v1196_v28  }
0x1584   :  { %v1154_v39 = vpop.permute.xlu1 %1153 }
0x1585   :  { %v1156_v59 = vadd.f32 %v1154_v39, %v1146_v37 }
0x1586   :  { %v1165_v61 = vpop.permute.xlu0 %1164 }
0x1587   :  { %1380 = vtanh.f32 %v1156_v59  ;;  %v2115_v24 = vadd.f32 %v1165_v61, %v1157_v22 }
0x1589   :  { %1382 = vtanh.f32 %v2115_v24 }
0x1594   :  { %v1381_v34 = vpop.eup %1380 }
0x1595   :  { %1170 = vrot.lane.b32.xlu1 %v1381_v34, %s1477_s24 }
0x1596   :  { %v1383_v3 = vpop.eup %1382 }
0x1597   :  { %1176 = vrot.lane.b32.xlu0 %v1383_v3, %s1477_s24 }
0x159b   :  { %413 = vrot.lane.b32.xlu0 %v1708_v54, %s1483_s1  ;;  %v282_v54 = vpop.permute.xlu1 %281 }
0x159c   :  { %v284_v10 = vmax.f32 %v102_v9, %v282_v54 }
0x159f   :  { %677 = vrot.lane.b32.xlu0 %v1858_v12, %s1483_s1  ;;  %v546_v12 = vpop.permute.xlu1 %545 }
0x15a3   :  { %941 = vrot.lane.b32.xlu0 %v2000_v2, %s1483_s1  ;;  %v810_v2 = vpop.permute.xlu1 %809 }
0x15a7   :  { %1073 = vrot.lane.b32.xlu0 %v1048_v31, %s1483_s1  ;;  %v1199_v31 = vpop.permute.xlu1 %1198 }
0x15a8   :  { %vm1200_vm1 = vcmp.eq.s32.totalorder %v1199_v31, 1 }
0x15a9   :  { %v1202_v28 = vsel %vm1200_vm1, %v2115_v24, %v2112_v63 }
0x15ab   :  { %1185 = vperm.xlu0 %1307, %v1183_v23  }
0x15af   :  { %265 = vrot.lane.b32.xlu0 %v1634_v60, %s1483_s1 }
0x15b3   :  { %532 = vrot.lane.b32.xlu0 %v1782_v51, %s1483_s1  ;;  %v285_v51 = vsel %vm274_vm8, %v284_v10, %v102_v9 }
0x15b7   :  { %796 = vrot.lane.b32.xlu0 %v1931_v20, %s1483_s1 }
0x15bb   :  { %1060 = vrot.lane.b32.xlu0 %v2057_v19, %s1483_s1 }
0x1607   :  { %v1171_v40 = vpop.permute.xlu1 %1170 }
0x1609   :  { %v1177_v1 = vpop.permute.xlu0 %1176 }
0x160a   :  { %v1179_v0 = vmul.f32 %v1177_v1, %v1145_v27 }
0x160c   :  { %1204 = vrot.lane.b32.xlu1 %v1179_v0, %s1483_s1  ;;  %v1201_v60 = vsel %vm1200_vm1, %v1179_v0, %v2072_v8 }
0x160d   :  { %1215 = vrot.lane.b32.xlu0 %v1201_v60, %s1483_s1  ;;  %v414_v20 = vpop.permute.xlu0 %413 }
0x160e   :  { %v416_v19 = vmax.f32 %v285_v51, %v414_v20 }
0x1610   :  { %400 = vrot.lane.b32.xlu1 %v1705_v52, %s1483_s1  ;;  %v417_v18 = vsel %vm409_vm12, %v416_v19, %v285_v51  ;;  %v1173_v52 = vmul.f32 %v1171_v40, %v2082_v21  ;;  %v101_v21 = vld [vmem:[#allocation6] sm:$0xff] }
0x1611   :  { %v548_v13 = vmax.f32 %v417_v18, %v546_v12  ;;  %v678_v15 = vpop.permute.xlu0 %677 }
0x1613   :  { %v549_v16 = vsel %vm541_vm2, %v548_v13, %v417_v18 }
0x1614   :  { %v680_v33 = vmax.f32 %v549_v16, %v678_v15  ;;  %664 = vrot.lane.b32.xlu1 %v1855_v53, %s1483_s1 }
0x1615   :  { %v942_v8 = vpop.permute.xlu0 %941 }
0x1616   :  { %v681_v57 = vsel %vm673_vm6, %v680_v33, %v549_v16 }
0x1617   :  { %v812_v55 = vmax.f32 %v681_v57, %v810_v2 }
0x1618   :  { %928 = vrot.lane.b32.xlu1 %v1997_v62, %s1483_s1 }
0x1619   :  { %v813_v50 = vsel %vm805_vm14, %v812_v55, %v681_v57  ;;  %v1074_v42 = vpop.permute.xlu0 %1073 }
0x161a   :  { %v944_v48 = vmax.f32 %v813_v50, %v942_v8 }
0x161c   :  { %v945_v45 = vsel %vm937_vm10, %v944_v48, %v813_v50  ;;  %1191 = vrot.lane.b32.xlu1 %v1173_v52, %s1483_s1 }
0x161d   :  { %v1076_v46 = vmax.f32 %v945_v45, %v1074_v42 }
0x161f   :  { %v1077_v53 = vsel %vm1069_vm4, %v1076_v46, %v945_v45 }
0x1626   :  { %v1186_v14 = vpop.permute.xlu0 %1185 }
0x1627   :  { %vm1187_vm8 = vcmp.eq.s32.totalorder %v1186_v14, 1 }
0x1628   :  { %v1188_v62 = vsel %vm1187_vm8, %v1173_v52, %v2064_v7  ;;  %v1189_v43 = vsel %vm1187_vm8, %v1156_v59, %v2105_v30 }
0x1629   :  { %1210 = vrot.lane.b32.xlu1 %v1188_v62, %s1483_s1 }
0x162a   :  { %v266_v25 = vpop.permute.xlu0 %265 }
0x162b   :  { %v268_v27 = vmax.f32 %v101_v21, %v266_v25 }
0x162d   :  { %1220 = vrot.lane.b32.xlu1 %v1189_v43, %s1485_s9  ;;  %v269_v4 = vsel %vm257_vm7, %v268_v27, %v101_v21  ;;  %vm2209_vm7 = vcmask 523264  }
0x162e   :  { %v533_v32 = vpop.permute.xlu0 %532 }
0x1632   :  { %v797_v44 = vpop.permute.xlu0 %796 }
0x1636   :  { %v1061_v38 = vpop.permute.xlu0 %1060 }
0x167e   :  { %v1205_v6 = vpop.permute.xlu1 %1204 }
0x167f   :  { %v1207_v29 = vmax.f32 %v1077_v53, %v1205_v6  ;;  %v1216_v26 = vpop.permute.xlu0 %1215 }
0x1680   :  { %1218 = vst.msk [vmem:[#allocation3] sm:$0xff] %vm72_vm0, %v1216_v26 }
0x1681   :  { %v1208_v7 = vsel %vm1200_vm1, %v1207_v29, %v1077_v53 }
0x1682   :  { %v401_v11 = vpop.permute.xlu1 %400  ;;  %1235 = vrot.lane.b32.xlu0 %v1208_v7, %s1483_s1  ;;  %1230 = vst.msk [vmem:[#allocation7] sm:$0xff] %vm72_vm0, %v1208_v7 }
0x1683   :  { %v403_v5 = vmax.f32 %v269_v4, %v401_v11 }
0x1685   :  { %v404_v30 = vsel %vm396_vm11, %v403_v5, %v269_v4 }
0x1686   :  { %v535_v37 = vmax.f32 %v404_v30, %v533_v32  ;;  %1225 = vrot.lane.b32.xlu0 %v1202_v28, %s1485_s9  ;;  %v665_v39 = vpop.permute.xlu1 %664 }
0x1688   :  { %v536_v56 = vsel %vm528_vm15, %v535_v37, %v404_v30 }
0x1689   :  { %v667_v59 = vmax.f32 %v536_v56, %v665_v39 }
0x168a   :  { %v929_v34 = vpop.permute.xlu1 %928 }
0x168b   :  { %v668_v22 = vsel %vm660_vm5, %v667_v59, %v536_v56 }
0x168c   :  { %v799_v61 = vmax.f32 %v668_v22, %v797_v44 }
0x168e   :  { %v800_v3 = vsel %vm792_vm13, %v799_v61, %v668_v22  ;;  %v1192_v49 = vpop.permute.xlu1 %1191 }
0x168f   :  { %v931_v63 = vmax.f32 %v800_v3, %v929_v34 }
0x1691   :  { %v932_v47 = vsel %vm924_vm9, %v931_v63, %v800_v3 }
0x1692   :  { %v1063_v24 = vmax.f32 %v932_v47, %v1061_v38 }
0x1694   :  { %v1064_v23 = vsel %vm1056_vm3, %v1063_v24, %v932_v47 }
0x1695   :  { %v1194_v41 = vmax.f32 %v1064_v23, %v1192_v49 }
0x1697   :  { %v1195_v54 = vsel %vm1187_vm8, %v1194_v41, %v1064_v23 }
0x1698   :  { %1229 = vst.msk [vmem:[#allocation6] sm:$0xff] %vm72_vm0, %v1195_v54 }
0x169b   :  { %v1211_v36 = vpop.permute.xlu1 %1210 }
0x169c   :  { %1213 = vst.msk [vmem:[#allocation2] sm:$0xff] %vm72_vm0, %v1211_v36 }
0x169f   :  { %v1221_v12 = vpop.permute.xlu1 %1220 }
0x16a0   :  { %1223 = vst.msk [vmem:[#allocation4] sm:$0xff] %vm72_vm0, %v1221_v12 }
0x16f4   :  { %v1236_v35 = vpop.permute.xlu0 %1235 }
0x16f5   :  { %v1238_v58 = vsel %vm72_vm0, %v1195_v54, %v1236_v35 }
0x16f6   :  { %1239 = vst.msk [vmem:[#allocation14] sm:$0xff] %vm2209_vm7, %v1238_v58 }
0x16f7   :  { %1459 = shalt.err (!%p1456_p5)
}
0x16f8   :  { %1249 = dma.vmem_to_hbm [thread:$0]  %s1247_s12, 128, %s2207_s4, [#allocation10]   ;;  %v1226_v17 = vpop.permute.xlu0 %1225 }
0x16f9   :  { %1228 = vst.msk [vmem:[#allocation5] sm:$0xff] %vm72_vm0, %v1226_v17 }
0x16fa   :  { %1472 = dma.done.wait [#allocation10], 128  }
0x16fb   :  { %1473 = vsyncadd [#allocation10], 4294967168 }
0x16fc   :  { %1253 = vsyncpa [#allocation9], 1 }
0x16fd   :  { %1254 = vsyncpa [#allocation12], 1 }
0x16fe   :  { %1255 = vsyncpa [#allocation10], 1 }

</bundles_post_ra>
